<compile_context>
chip_gen: v5e
topology: v5e:2x2
jax: 0.10.0
libtpu: 0.0.40
codegen_flags: <defaults>
</compile_context>

<pallas_src>
import inspect
import math

import jax
import jax.numpy as jnp
from jax.experimental import pallas as pl
from jax.experimental.pallas import tpu as pltpu

_FORI_HAS_UNROLL = "unroll" in inspect.signature(jax.lax.fori_loop).parameters


def _silu(x):
    return x * (1.0 / (1.0 + jnp.exp(-x)))


def _softplus(x):
    # numerically stable softplus (matches F.softplus semantics closely)
    return jnp.maximum(x, 0.0) + jnp.log1p(jnp.exp(-jnp.abs(x)))


def _rmsnorm(x, w, eps=1e-5):
    ms = jnp.mean(x * x, axis=-1, keepdims=True)
    return x * jax.lax.rsqrt(ms + eps) * w[None, :]


def _pick_chunk(L):
    for c in (16, 8):
        if L % c == 0:
            return c
    for c in range(min(L, 16), 0, -1):
        if L % c == 0:
            return c
    return L


def _vmem_limit_bytes():
    cap = 128 * 1024 * 1024
    try:
        info = pltpu.get_tpu_info()
        cap = int(getattr(info, "vmem_capacity_bytes", cap) or cap)
    except Exception:
        pass
    # leave ~25% headroom for Mosaic internal scratch and I/O double-buffers
    # (-> ~96 MiB on v5e/v6e, ~48 MiB on v7x)
    return int(cap * 3 // 4)


def make_mamba_kernel(seq_len, d_model, d_inner, d_state, dt_rank, d_conv,
                      input_dim, chunk, return_all):
    L, CH = seq_len, chunk
    num_chunks = L // CH

    def kernel(x_ref, w_emb_ref, b_emb_ref, norm_w_ref, in_proj_ref, conv_w_ref,
               conv_b_ref, x_proj_ref, dt_w_ref, dt_b_ref, a_logT_ref, d_ref,
               out_proj_ref, norm_f_ref, lm_head_ref, o_ref,
               h_s, dlt_s, du_s, xdbl_s, y_s):
        layer = pl.program_id(1)
        n_layers = pl.num_programs(1)

        # ---- layer 0: embedding -> residual stream scratch ------------------
        @pl.when(layer == 0)
        def _():
            x = x_ref[0]                                   # (L, Din) f32
            w_emb = w_emb_ref[...]                         # (Din, dm) f32
            b_emb = b_emb_ref[0]                           # (dm,)
            if input_dim >= 16:
                # K large enough for an MXU pass (bf16 operands, f32 acc)
                h0 = jnp.dot(x.astype(jnp.bfloat16),
                             w_emb.astype(jnp.bfloat16),
                             preferred_element_type=jnp.float32) + b_emb[None, :]
            else:
                # tiny-K embedding: VPU multiply-accumulate, stays f32
                h0 = jnp.broadcast_to(b_emb[None, :], (L, d_model))
                for k in range(input_dim):
                    h0 = h0 + x[:, k:k + 1] * w_emb[k][None, :]
            h_s[...] = h0

        h = h_s[...]                                       # (L, dm) f32 carry

        # --- ResidualBlock: mixer(norm(h)) + h ---
        xn = _rmsnorm(h, norm_w_ref[0, 0])

        # in_proj (no bias): bf16 operands, f32 accumulation on the MXU
        xr = jnp.dot(xn.astype(jnp.bfloat16), in_proj_ref[0],
                     preferred_element_type=jnp.float32)   # (L, 2*din)
        xs = xr[:, :d_inner]
        res = xr[:, d_inner:]

        # depthwise causal conv1d: per-tap sublane roll (XLU) + causal mask
        row = jax.lax.broadcasted_iota(jnp.int32, (L, d_inner), 0)
        cw = conv_w_ref[0]                                  # (d_conv, din)
        conv = jnp.broadcast_to(conv_b_ref[0, 0][None, :], (L, d_inner))
        for k in range(d_conv):
            s = d_conv - 1 - k
            if s == 0:
                shifted = xs
            else:
                shifted = jnp.where(row >= s,
                                    pltpu.roll(xs, shift=s, axis=0), 0.0)
            conv = conv + shifted * cw[k][None, :]
        xs = _silu(conv)                                    # (L, din) f32

        # --- SSM projections ---
        x_dbl = jnp.dot(xs.astype(jnp.bfloat16), x_proj_ref[0],
                        preferred_element_type=jnp.float32)  # (L, r+2n)
        xdbl_s[...] = x_dbl          # packed scratch; B/C lanes sliced per chunk
        delta_lr = x_dbl[:, :dt_rank]

        dt_w = dt_w_ref[0]                                  # (r, din)
        dt_b = dt_b_ref[0, 0]                               # (din,)
        if dt_rank >= 8:
            # production-rank dt projection -> MXU
            dpre = jnp.dot(delta_lr.astype(jnp.bfloat16),
                           dt_w.astype(jnp.bfloat16),
                           preferred_element_type=jnp.float32) + dt_b[None, :]
        else:
            # dt_rank == 1 toy case -> VPU MAC, stays f32
            dpre = jnp.broadcast_to(dt_b[None, :], (L, d_inner))
            for r in range(dt_rank):
                dpre = dpre + delta_lr[:, r:r + 1] * dt_w[r][None, :]
        delta = _softplus(dpre)                             # (L, din) f32

        A_T = -jnp.exp(a_logT_ref[0])                       # (n, din) lane-dense

        # stage scan inputs once; the recurrence reads CH-row chunks
        dlt_s[...] = delta
        du_s[...] = delta * xs

        def chunk_body(c, state):
            start = pl.multiple_of(c * CH, CH)
            dlt_c = dlt_s[pl.ds(start, CH), :]              # (CH, din)
            du_c = du_s[pl.ds(start, CH), :]                # (CH, din)
            bc = xdbl_s[pl.ds(start, CH), :]                # (CH, r+2n)
            b_c = bc[:, dt_rank:dt_rank + d_state]          # (CH, n)
            c_c = bc[:, dt_rank + d_state:]                 # (CH, n)
            # TODO(synk): on v6e/v7x a bf16 exp here ~doubles EUP throughput;
            # needs accuracy validation (decay error compounds over L steps).
            dA = jnp.exp(dlt_c[:, None, :] * A_T[None, :, :])   # (CH, n, din)
            dBu = b_c[:, :, None] * du_c[:, None, :]            # (CH, n, din)
            states = []
            for t in range(CH):
                state = dA[t] * state + dBu[t]                  # (n, din) VPU
                states.append(state)
            st = jnp.stack(states, axis=0)                      # (CH, n, din)
            # one batched multiply + one XLU reduce + one lane-dense store
            y_s[pl.ds(start, CH), :] = jnp.sum(st * c_c[:, :, None], axis=1)
            return state

        state0 = jnp.zeros((d_state, d_inner), jnp.float32)     # per-layer init
        if _FORI_HAS_UNROLL:
            jax.lax.fori_loop(0, num_chunks, chunk_body, state0, unroll=True)
        else:
            jax.lax.fori_loop(0, num_chunks, chunk_body, state0)

        y = y_s[...] + xs * d_ref[0, 0][None, :]
        y = y * _silu(res)

        # out_proj (no bias) + residual; carry to the next layer via scratch
        h_new = jnp.dot(y.astype(jnp.bfloat16), out_proj_ref[0],
                        preferred_element_type=jnp.float32) + h
        h_s[...] = h_new

        # ---- last layer: final RMSNorm + lm_head -----------------------------
        @pl.when(layer == n_layers - 1)
        def _():
            hn = _rmsnorm(h_new, norm_f_ref[0])
            lm = lm_head_ref[...]
            if return_all:
                o_ref[0] = jnp.dot(hn.astype(jnp.bfloat16), lm,
                                   preferred_element_type=jnp.float32)
            else:
                # last-token-only lm_head: skip the (L x dm x Din) matmul and
                # the (B, L, Din) HBM writeback that would be discarded
                o_ref[0] = jnp.dot(hn[L - 1:L, :].astype(jnp.bfloat16), lm,
                                   preferred_element_type=jnp.float32)

    return kernel


def mamba_forward(x, params, *, n_layer, d_model, d_inner, d_state, dt_rank,
                  d_conv, return_all=False):
    B, L, din = x.shape
    (w_emb, b_emb, norm_w, in_proj, conv_w, conv_b, x_proj, dt_w, dt_b,
     a_log, d_param, out_proj, norm_f, lm_head) = params

    # layout / dtype plumbing for the kernel:
    #  * MXU matmul weights -> bf16 (f32 accumulation in-kernel)
    #  * A_log pre-transposed to (layer, d_state, d_inner): scan state lane-dense
    #  * 2-D per-layer stacks reshaped to (layer, 1, d) so the per-layer block
    #    keeps full trailing dims (Mosaic (8,128)-or-full-dim block rule)
    kparams = [
        w_emb,                                              # (Din, dm)
        b_emb,                                              # (1, dm)
        norm_w.reshape(n_layer, 1, d_model),
        in_proj.astype(jnp.bfloat16),                       # (nl, dm, 2*din)
        conv_w,                                             # (nl, dc, din)
        conv_b.reshape(n_layer, 1, d_inner),
        x_proj.astype(jnp.bfloat16),                        # (nl, din, r+2n)
        dt_w,                                               # (nl, r, din)
        dt_b.reshape(n_layer, 1, d_inner),
        jnp.transpose(a_log, (0, 2, 1)),                    # (nl, n, din)
        d_param.reshape(n_layer, 1, d_inner),
        out_proj.astype(jnp.bfloat16),                      # (nl, din, dm)
        norm_f,                                             # (1, dm)
        lm_head.astype(jnp.bfloat16),                       # (dm, Din)
    ]
    # which operands carry a leading layer axis (streamed over the layer grid)
    is_per_layer = [False, False, True, True, True, True, True, True, True,
                    True, True, True, False, False]

    chunk = _pick_chunk(L)
    kernel = make_mamba_kernel(L, d_model, d_inner, d_state, dt_rank, d_conv,
                               din, chunk, return_all)

    def layer_spec(a):
        zeros = (0,) * (a.ndim - 1)
        return pl.BlockSpec((1,) + a.shape[1:],
                            lambda b, l, _z=zeros: (l,) + _z)

    def const_spec(a):
        nd = a.ndim
        return pl.BlockSpec(a.shape, lambda b, l, _nd=nd: (0,) * _nd)

    in_specs = [pl.BlockSpec((1, L, din), lambda b, l: (b, 0, 0))]
    for a, per_layer in zip(kparams, is_per_layer):
        in_specs.append(layer_spec(a) if per_layer else const_spec(a))

    out_rows = L if return_all else 1
    out_spec = pl.BlockSpec((1, out_rows, din), lambda b, l: (b, 0, 0))

    out = pl.pallas_call(
        kernel,
        out_shape=jax.ShapeDtypeStruct((B, out_rows, din), jnp.float32),
        grid_spec=pltpu.PrefetchScalarGridSpec(
            num_scalar_prefetch=0,
            grid=(B, n_layer),
            in_specs=in_specs,
            out_specs=out_spec,
            scratch_shapes=[
                pltpu.VMEM((L, d_model), jnp.float32),               # residual h
                pltpu.VMEM((L, d_inner), jnp.float32),               # delta
                pltpu.VMEM((L, d_inner), jnp.float32),               # delta * u
                pltpu.VMEM((L, dt_rank + 2 * d_state), jnp.float32), # x_dbl (B/C)
                pltpu.VMEM((L, d_inner), jnp.float32),               # y
            ],
        ),
        compiler_params=pltpu.CompilerParams(
            dimension_semantics=("parallel", "arbitrary"),
            vmem_limit_bytes=_vmem_limit_bytes(),
        ),
    )(x, *kparams)

    if return_all:
        return out
    return out[:, 0, :]


def ref_forward(x, params, *, n_layer, d_model, d_inner, d_state, dt_rank,
                d_conv, return_all=False):
    """Pure-JAX reference mirroring the kernel's bf16 quantization points."""
    (w_emb, b_emb, norm_w, in_proj, conv_w, conv_b, x_proj, dt_w, dt_b,
     a_log, d_param, out_proj, norm_f, lm_head) = params

    def q(a):
        return a.astype(jnp.bfloat16).astype(jnp.float32)

    hp = jax.lax.Precision.HIGHEST
    B, L, din = x.shape
    if din >= 16:
        h = jnp.dot(q(x), q(w_emb), precision=hp) + b_emb[0]
    else:
        h = jnp.dot(x, w_emb, precision=hp) + b_emb[0]
    for l in range(n_layer):
        xn = _rmsnorm(h, norm_w[l])
        xr = jnp.dot(q(xn), q(in_proj[l]), precision=hp)
        xs, res = xr[..., :d_inner], xr[..., d_inner:]
        xp = jnp.pad(xs, ((0, 0), (d_conv - 1, 0), (0, 0)))
        conv = conv_b[l]
        for k in range(d_conv):
            conv = conv + xp[:, k:k + L, :] * conv_w[l, k]
        xs = _silu(conv)
        x_dbl = jnp.dot(q(xs), q(x_proj[l]), precision=hp)
        delta_lr = x_dbl[..., :dt_rank]
        Bm = x_dbl[..., dt_rank:dt_rank + d_state]
        Cm = x_dbl[..., dt_rank + d_state:]
        if dt_rank >= 8:
            dpre = jnp.dot(q(delta_lr), q(dt_w[l]), precision=hp) + dt_b[l]
        else:
            dpre = jnp.dot(delta_lr, dt_w[l], precision=hp) + dt_b[l]
        delta = _softplus(dpre)
        A = -jnp.exp(a_log[l])                                    # (din, n)
        dA = jnp.exp(delta[..., None] * A[None, None])            # (B, L, din, n)
        dBu = delta[..., None] * Bm[:, :, None, :] * xs[..., None]
        state = jnp.zeros((B, d_inner, d_state), jnp.float32)
        ys = []
        for t in range(L):
            state = dA[:, t] * state + dBu[:, t]
            ys.append(jnp.sum(state * Cm[:, t][:, None, :], axis=-1))
        y = jnp.stack(ys, axis=1)                                 # (B, L, din)
        y = y + xs * d_param[l]
        y = y * _silu(res)
        h = jnp.dot(q(y), q(out_proj[l]), precision=hp) + h
    hn = _rmsnorm(h, norm_f[0])
    out = jnp.dot(q(hn), q(lm_head), precision=hp)
    if not return_all:
        out = out[:, -1, :]
    return out


def init_params(key, input_dim, n_layer, d_model, d_inner, d_state, dt_rank, d_conv):
    ks = jax.random.split(key, 10)
    s = 0.1
    w_emb = s * jax.random.normal(ks[0], (input_dim, d_model), jnp.float32)
    b_emb = s * jax.random.normal(ks[1], (1, d_model), jnp.float32)
    norm_w = jnp.ones((n_layer, d_model), jnp.float32)
    in_proj = s * jax.random.normal(ks[2], (n_layer, d_model, 2 * d_inner), jnp.float32)
    conv_w = s * jax.random.normal(ks[3], (n_layer, d_conv, d_inner), jnp.float32)
    conv_b = s * jax.random.normal(ks[4], (n_layer, d_inner), jnp.float32)
    x_proj = s * jax.random.normal(ks[5], (n_layer, d_inner, dt_rank + 2 * d_state),
                                   jnp.float32)
    dt_w = s * jax.random.normal(ks[6], (n_layer, dt_rank, d_inner), jnp.float32)
    dt_b = s * jax.random.normal(ks[7], (n_layer, d_inner), jnp.float32)
    a_log = jnp.tile(
        jnp.log(jnp.arange(1, d_state + 1, dtype=jnp.float32))[None, None, :],
        (n_layer, d_inner, 1))
    d_param = jnp.ones((n_layer, d_inner), jnp.float32)
    out_proj = s * jax.random.normal(ks[8], (n_layer, d_inner, d_model), jnp.float32)
    norm_f = jnp.ones((1, d_model), jnp.float32)
    lm_head = s * jax.random.normal(ks[9], (d_model, input_dim), jnp.float32)
    return [w_emb, b_emb, norm_w, in_proj, conv_w, conv_b, x_proj, dt_w, dt_b,
            a_log, d_param, out_proj, norm_f, lm_head]


if __name__ == "__main__":
    # MambaModel(input_dim=4, latent_dim=32, output_dim=4, num_layers=2,
    #            hidden_multiplier=2) -> d_model = 2*8 = 16
    input_dim = 4
    num_layers = 2
    hidden_multiplier = 2
    d_model = hidden_multiplier * 8
    d_inner = 2 * d_model                 # expand=2
    d_state = 16
    dt_rank = math.ceil(d_model / 16)     # 'auto'
    d_conv = 4

    B, L = 2, 8                           # batch, sequence length

    key = jax.random.PRNGKey(0)
    kx, kp = jax.random.split(key)
    x = jax.random.normal(kx, (B, L, input_dim), jnp.float32)
    params = init_params(kp, input_dim, num_layers, d_model, d_inner,
                         d_state, dt_rank, d_conv)

    out = mamba_forward(x, params, n_layer=num_layers, d_model=d_model,
                        d_inner=d_inner, d_state=d_state, dt_rank=dt_rank,
                        d_conv=d_conv, return_all=False)
    out = jax.block_until_ready(out)
    assert out.shape == (B, input_dim), out.shape
    assert bool(jnp.all(jnp.isfinite(out)))

    ref = ref_forward(x, params, n_layer=num_layers, d_model=d_model,
                      d_inner=d_inner, d_state=d_state, dt_rank=dt_rank,
                      d_conv=d_conv, return_all=False)
    err = float(jnp.max(jnp.abs(out - ref)))
    assert err < 1e-2, f"kernel vs reference mismatch: max abs err = {err}"
    print("KERNEL_OK")
</pallas_src>

<mosaic_0001>
module attributes {stable_mosaic.version = 11 : i64} {
  func.func @kernel(%arg0: i32, %arg1: i32, %arg2: memref<1x8x4xf32, #tpu.memory_space<vmem>>, %arg3: memref<4x16xf32, #tpu.memory_space<vmem>>, %arg4: memref<1x16xf32, #tpu.memory_space<vmem>>, %arg5: memref<1x1x16xf32, #tpu.memory_space<vmem>>, %arg6: memref<1x16x64xbf16, #tpu.memory_space<vmem>>, %arg7: memref<1x4x32xf32, #tpu.memory_space<vmem>>, %arg8: memref<1x1x32xf32, #tpu.memory_space<vmem>>, %arg9: memref<1x32x33xbf16, #tpu.memory_space<vmem>>, %arg10: memref<1x1x32xf32, #tpu.memory_space<vmem>>, %arg11: memref<1x1x32xf32, #tpu.memory_space<vmem>>, %arg12: memref<1x16x32xf32, #tpu.memory_space<vmem>>, %arg13: memref<1x1x32xf32, #tpu.memory_space<vmem>>, %arg14: memref<1x32x16xbf16, #tpu.memory_space<vmem>>, %arg15: memref<1x16xf32, #tpu.memory_space<vmem>>, %arg16: memref<16x4xbf16, #tpu.memory_space<vmem>>, %arg17: memref<1x1x4xf32, #tpu.memory_space<vmem>>, %arg18: memref<8x16xf32, #tpu.memory_space<vmem>>, %arg19: memref<8x32xf32, #tpu.memory_space<vmem>>, %arg20: memref<8x32xf32, #tpu.memory_space<vmem>>, %arg21: memref<8x33xf32, #tpu.memory_space<vmem>>, %arg22: memref<8x32xf32, #tpu.memory_space<vmem>>) attributes {dimension_semantics = [#tpu.dimension_semantics<parallel>, #tpu.dimension_semantics<arbitrary>], iteration_bounds = array<i64: 2, 2>, scalar_prefetch = 0 : i64, scratch_operands = 5 : i64, tpu.core_type = #tpu.core_type<tc>, window_params = [{transform_indices = @transform_0, window_bounds = array<i64: 1, 8, 4>}, {pipeline_mode = #tpu.pipeline_mode<synchronous>, transform_indices = @transform_1, window_bounds = array<i64: 4, 16>}, {pipeline_mode = #tpu.pipeline_mode<synchronous>, transform_indices = @transform_2, window_bounds = array<i64: 1, 16>}, {transform_indices = @transform_3, window_bounds = array<i64: 1, 1, 16>}, {transform_indices = @transform_4, window_bounds = array<i64: 1, 16, 64>}, {transform_indices = @transform_5, window_bounds = array<i64: 1, 4, 32>}, {transform_indices = @transform_6, window_bounds = array<i64: 1, 1, 32>}, {transform_indices = @transform_7, window_bounds = array<i64: 1, 32, 33>}, {transform_indices = @transform_8, window_bounds = array<i64: 1, 1, 32>}, {transform_indices = @transform_9, window_bounds = array<i64: 1, 1, 32>}, {transform_indices = @transform_10, window_bounds = array<i64: 1, 16, 32>}, {transform_indices = @transform_11, window_bounds = array<i64: 1, 1, 32>}, {transform_indices = @transform_12, window_bounds = array<i64: 1, 32, 16>}, {pipeline_mode = #tpu.pipeline_mode<synchronous>, transform_indices = @transform_13, window_bounds = array<i64: 1, 16>}, {pipeline_mode = #tpu.pipeline_mode<synchronous>, transform_indices = @transform_14, window_bounds = array<i64: 16, 4>}, {transform_indices = @transform_15, window_bounds = array<i64: 1, 1, 4>}]} {
    %c0_i32 = arith.constant 0 : i32
    %0 = arith.cmpi eq, %arg1, %c0_i32 : i32
    %1 = arith.extui %0 : i1 to i32
    %c0_i32_0 = arith.constant 0 : i32
    %2 = arith.cmpi ne, %1, %c0_i32_0 : i32
    scf.if %2 {
      %c0_72 = arith.constant 0 : index
      %c0_73 = arith.constant 0 : index
      %c0_74 = arith.constant 0 : index
      %225 = vector.load %arg2[%c0_72, %c0_73, %c0_74] : memref<1x8x4xf32, #tpu.memory_space<vmem>>, vector<1x8x4xf32>
      %226 = vector.shape_cast %225 : vector<1x8x4xf32> to vector<8x4xf32>
      %c0_75 = arith.constant 0 : index
      %c0_76 = arith.constant 0 : index
      %227 = vector.load %arg3[%c0_75, %c0_76] : memref<4x16xf32, #tpu.memory_space<vmem>>, vector<4x16xf32>
      %c0_77 = arith.constant 0 : index
      %c0_78 = arith.constant 0 : index
      %228 = vector.load %arg4[%c0_77, %c0_78] : memref<1x16xf32, #tpu.memory_space<vmem>>, vector<1x16xf32>
      %229 = vector.shape_cast %228 : vector<1x16xf32> to vector<16xf32>
      %230 = vector.shape_cast %229 : vector<16xf32> to vector<1x16xf32>
      %231 = vector.shape_cast %230 : vector<1x16xf32> to vector<1x16xf32>
      %232 = vector.broadcast %231 : vector<1x16xf32> to vector<8x16xf32>
      %233 = vector.extract_strided_slice %226 {offsets = [0, 0], sizes = [8, 1], strides = [1, 1]} : vector<8x4xf32> to vector<8x1xf32>
      %234 = vector.extract_strided_slice %227 {offsets = [0, 0], sizes = [1, 16], strides = [1, 1]} : vector<4x16xf32> to vector<1x16xf32>
      %235 = vector.shape_cast %234 : vector<1x16xf32> to vector<16xf32>
      %236 = vector.shape_cast %235 : vector<16xf32> to vector<1x16xf32>
      %237 = vector.broadcast %233 : vector<8x1xf32> to vector<8x16xf32>
      %238 = vector.broadcast %236 : vector<1x16xf32> to vector<8x16xf32>
      %239 = arith.mulf %237, %238 : vector<8x16xf32>
      %240 = arith.addf %232, %239 : vector<8x16xf32>
      %241 = vector.extract_strided_slice %226 {offsets = [0, 1], sizes = [8, 1], strides = [1, 1]} : vector<8x4xf32> to vector<8x1xf32>
      %242 = vector.extract_strided_slice %227 {offsets = [1, 0], sizes = [1, 16], strides = [1, 1]} : vector<4x16xf32> to vector<1x16xf32>
      %243 = vector.shape_cast %242 : vector<1x16xf32> to vector<16xf32>
      %244 = vector.shape_cast %243 : vector<16xf32> to vector<1x16xf32>
      %245 = vector.broadcast %241 : vector<8x1xf32> to vector<8x16xf32>
      %246 = vector.broadcast %244 : vector<1x16xf32> to vector<8x16xf32>
      %247 = arith.mulf %245, %246 : vector<8x16xf32>
      %248 = arith.addf %240, %247 : vector<8x16xf32>
      %249 = vector.extract_strided_slice %226 {offsets = [0, 2], sizes = [8, 1], strides = [1, 1]} : vector<8x4xf32> to vector<8x1xf32>
      %250 = vector.extract_strided_slice %227 {offsets = [2, 0], sizes = [1, 16], strides = [1, 1]} : vector<4x16xf32> to vector<1x16xf32>
      %251 = vector.shape_cast %250 : vector<1x16xf32> to vector<16xf32>
      %252 = vector.shape_cast %251 : vector<16xf32> to vector<1x16xf32>
      %253 = vector.broadcast %249 : vector<8x1xf32> to vector<8x16xf32>
      %254 = vector.broadcast %252 : vector<1x16xf32> to vector<8x16xf32>
      %255 = arith.mulf %253, %254 : vector<8x16xf32>
      %256 = arith.addf %248, %255 : vector<8x16xf32>
      %257 = vector.extract_strided_slice %226 {offsets = [0, 3], sizes = [8, 1], strides = [1, 1]} : vector<8x4xf32> to vector<8x1xf32>
      %258 = vector.extract_strided_slice %227 {offsets = [3, 0], sizes = [1, 16], strides = [1, 1]} : vector<4x16xf32> to vector<1x16xf32>
      %259 = vector.shape_cast %258 : vector<1x16xf32> to vector<16xf32>
      %260 = vector.shape_cast %259 : vector<16xf32> to vector<1x16xf32>
      %261 = vector.broadcast %257 : vector<8x1xf32> to vector<8x16xf32>
      %262 = vector.broadcast %260 : vector<1x16xf32> to vector<8x16xf32>
      %263 = arith.mulf %261, %262 : vector<8x16xf32>
      %264 = arith.addf %256, %263 : vector<8x16xf32>
      %c0_79 = arith.constant 0 : index
      %c0_80 = arith.constant 0 : index
      %265 = vector.load %arg18[%c0_79, %c0_80] : memref<8x16xf32, #tpu.memory_space<vmem>>, vector<8x16xf32>
      tpu.vector_store %arg18[%c0_79, %c0_80], %264 {strides = array<i32>} : memref<8x16xf32, #tpu.memory_space<vmem>>, vector<8x16xf32>,
    } else {
    }
    %c0 = arith.constant 0 : index
    %c0_1 = arith.constant 0 : index
    %3 = vector.load %arg18[%c0, %c0_1] : memref<8x16xf32, #tpu.memory_space<vmem>>, vector<8x16xf32>
    %c0_2 = arith.constant 0 : index
    %c0_3 = arith.constant 0 : index
    %c0_4 = arith.constant 0 : index
    %4 = vector.load %arg5[%c0_2, %c0_3, %c0_4] : memref<1x1x16xf32, #tpu.memory_space<vmem>>, vector<1x1x16xf32>
    %5 = vector.shape_cast %4 : vector<1x1x16xf32> to vector<16xf32>
    %6 = arith.mulf %3, %3 : vector<8x16xf32>
    %cst = arith.constant dense<0.000000e+00> : vector<8xf32>
    %7 = vector.multi_reduction <add>, %6, %cst [1] : vector<8x16xf32> to vector<8xf32>
    %8 = vector.shape_cast %7 : vector<8xf32> to vector<8x1xf32>
    %cst_5 = arith.constant 1.600000e+01 : f32
    %9 = vector.broadcast %cst_5 : f32 to vector<8x1xf32>
    %10 = arith.divf %8, %9 : vector<8x1xf32>
    %cst_6 = arith.constant 9.99999974E-6 : f32
    %11 = vector.broadcast %cst_6 : f32 to vector<8x1xf32>
    %12 = arith.addf %10, %11 : vector<8x1xf32>
    %13 = math.rsqrt %12 : vector<8x1xf32>
    %14 = vector.broadcast %13 : vector<8x1xf32> to vector<8x16xf32>
    %15 = arith.mulf %3, %14 : vector<8x16xf32>
    %16 = vector.shape_cast %5 : vector<16xf32> to vector<1x16xf32>
    %17 = vector.broadcast %16 : vector<1x16xf32> to vector<8x16xf32>
    %18 = arith.mulf %15, %17 : vector<8x16xf32>
    %19 = arith.truncf %18 : vector<8x16xf32> to vector<8x16xbf16>
    %c0_7 = arith.constant 0 : index
    %c0_8 = arith.constant 0 : index
    %c0_9 = arith.constant 0 : index
    %20 = vector.load %arg6[%c0_7, %c0_8, %c0_9] : memref<1x16x64xbf16, #tpu.memory_space<vmem>>, vector<1x16x64xbf16>
    %21 = vector.shape_cast %20 : vector<1x16x64xbf16> to vector<16x64xbf16>
    %cst_10 = arith.constant dense<0.000000e+00> : vector<8x64xf32>
    %22 = tpu.matmul %19, %21, %cst_10 {dimension_numbers = #tpu.dot_dimension_numbers<[1], [0], [0], [1], [0, 0, 1, 1], [], []>} : vector<8x16xbf16>, vector<16x64xbf16>, vector<8x64xf32> -> vector<8x64xf32>
    %23 = vector.extract_strided_slice %22 {offsets = [0, 0], sizes = [8, 32], strides = [1, 1]} : vector<8x64xf32> to vector<8x32xf32>
    %24 = vector.extract_strided_slice %22 {offsets = [0, 32], sizes = [8, 32], strides = [1, 1]} : vector<8x64xf32> to vector<8x32xf32>
    %25 = tpu.iota {dimensions = array<i32: 0>} : vector<8x32xi32>
    %c0_11 = arith.constant 0 : index
    %c0_12 = arith.constant 0 : index
    %c0_13 = arith.constant 0 : index
    %26 = vector.load %arg7[%c0_11, %c0_12, %c0_13] : memref<1x4x32xf32, #tpu.memory_space<vmem>>, vector<1x4x32xf32>
    %27 = vector.shape_cast %26 : vector<1x4x32xf32> to vector<4x32xf32>
    %c0_14 = arith.constant 0 : index
    %c0_15 = arith.constant 0 : index
    %c0_16 = arith.constant 0 : index
    %28 = vector.load %arg8[%c0_14, %c0_15, %c0_16] : memref<1x1x32xf32, #tpu.memory_space<vmem>>, vector<1x1x32xf32>
    %29 = vector.shape_cast %28 : vector<1x1x32xf32> to vector<32xf32>
    %30 = vector.shape_cast %29 : vector<32xf32> to vector<1x32xf32>
    %31 = vector.shape_cast %30 : vector<1x32xf32> to vector<1x32xf32>
    %32 = vector.broadcast %31 : vector<1x32xf32> to vector<8x32xf32>
    %c3_i32 = arith.constant 3 : i32
    %33 = vector.broadcast %c3_i32 : i32 to vector<8x32xi32>
    %34 = arith.cmpi sge, %25, %33 : vector<8x32xi32>
    %c3_i32_17 = arith.constant 3 : i32
    %35 = tpu.dynamic_rotate %23 by %c3_i32_17 dim 0 : vector<8x32xf32>, i32 -> vector<8x32xf32>
    %cst_18 = arith.constant 0.000000e+00 : f32
    %36 = vector.broadcast %cst_18 : f32 to vector<8x32xf32>
    %37 = arith.select %34, %35, %36 : vector<8x32xi1>, vector<8x32xf32>
    %38 = vector.extract_strided_slice %27 {offsets = [0, 0], sizes = [1, 32], strides = [1, 1]} : vector<4x32xf32> to vector<1x32xf32>
    %39 = vector.shape_cast %38 : vector<1x32xf32> to vector<32xf32>
    %40 = vector.shape_cast %39 : vector<32xf32> to vector<1x32xf32>
    %41 = vector.broadcast %40 : vector<1x32xf32> to vector<8x32xf32>
    %42 = arith.mulf %37, %41 : vector<8x32xf32>
    %43 = arith.addf %32, %42 : vector<8x32xf32>
    %c2_i32 = arith.constant 2 : i32
    %44 = vector.broadcast %c2_i32 : i32 to vector<8x32xi32>
    %45 = arith.cmpi sge, %25, %44 : vector<8x32xi32>
    %c2_i32_19 = arith.constant 2 : i32
    %46 = tpu.dynamic_rotate %23 by %c2_i32_19 dim 0 : vector<8x32xf32>, i32 -> vector<8x32xf32>
    %cst_20 = arith.constant 0.000000e+00 : f32
    %47 = vector.broadcast %cst_20 : f32 to vector<8x32xf32>
    %48 = arith.select %45, %46, %47 : vector<8x32xi1>, vector<8x32xf32>
    %49 = vector.extract_strided_slice %27 {offsets = [1, 0], sizes = [1, 32], strides = [1, 1]} : vector<4x32xf32> to vector<1x32xf32>
    %50 = vector.shape_cast %49 : vector<1x32xf32> to vector<32xf32>
    %51 = vector.shape_cast %50 : vector<32xf32> to vector<1x32xf32>
    %52 = vector.broadcast %51 : vector<1x32xf32> to vector<8x32xf32>
    %53 = arith.mulf %48, %52 : vector<8x32xf32>
    %54 = arith.addf %43, %53 : vector<8x32xf32>
    %c1_i32 = arith.constant 1 : i32
    %55 = vector.broadcast %c1_i32 : i32 to vector<8x32xi32>
    %56 = arith.cmpi sge, %25, %55 : vector<8x32xi32>
    %c1_i32_21 = arith.constant 1 : i32
    %57 = tpu.dynamic_rotate %23 by %c1_i32_21 dim 0 : vector<8x32xf32>, i32 -> vector<8x32xf32>
    %cst_22 = arith.constant 0.000000e+00 : f32
    %58 = vector.broadcast %cst_22 : f32 to vector<8x32xf32>
    %59 = arith.select %56, %57, %58 : vector<8x32xi1>, vector<8x32xf32>
    %60 = vector.extract_strided_slice %27 {offsets = [2, 0], sizes = [1, 32], strides = [1, 1]} : vector<4x32xf32> to vector<1x32xf32>
    %61 = vector.shape_cast %60 : vector<1x32xf32> to vector<32xf32>
    %62 = vector.shape_cast %61 : vector<32xf32> to vector<1x32xf32>
    %63 = vector.broadcast %62 : vector<1x32xf32> to vector<8x32xf32>
    %64 = arith.mulf %59, %63 : vector<8x32xf32>
    %65 = arith.addf %54, %64 : vector<8x32xf32>
    %66 = vector.extract_strided_slice %27 {offsets = [3, 0], sizes = [1, 32], strides = [1, 1]} : vector<4x32xf32> to vector<1x32xf32>
    %67 = vector.shape_cast %66 : vector<1x32xf32> to vector<32xf32>
    %68 = vector.shape_cast %67 : vector<32xf32> to vector<1x32xf32>
    %69 = vector.broadcast %68 : vector<1x32xf32> to vector<8x32xf32>
    %70 = arith.mulf %23, %69 : vector<8x32xf32>
    %71 = arith.addf %65, %70 : vector<8x32xf32>
    %cst_23 = arith.constant 0.000000e+00 : f32
    %72 = vector.broadcast %cst_23 : f32 to vector<8x32xf32>
    %73 = arith.subf %72, %71 : vector<8x32xf32>
    %74 = math.exp %73 : vector<8x32xf32>
    %cst_24 = arith.constant 1.000000e+00 : f32
    %75 = vector.broadcast %cst_24 : f32 to vector<8x32xf32>
    %76 = arith.addf %75, %74 : vector<8x32xf32>
    %cst_25 = arith.constant 1.000000e+00 : f32
    %77 = vector.broadcast %cst_25 : f32 to vector<8x32xf32>
    %78 = arith.divf %77, %76 : vector<8x32xf32>
    %79 = arith.mulf %71, %78 : vector<8x32xf32>
    %80 = arith.truncf %79 : vector<8x32xf32> to vector<8x32xbf16>
    %c0_26 = arith.constant 0 : index
    %c0_27 = arith.constant 0 : index
    %c0_28 = arith.constant 0 : index
    %81 = vector.load %arg9[%c0_26, %c0_27, %c0_28] : memref<1x32x33xbf16, #tpu.memory_space<vmem>>, vector<1x32x33xbf16>
    %82 = vector.shape_cast %81 : vector<1x32x33xbf16> to vector<32x33xbf16>
    %cst_29 = arith.constant dense<0.000000e+00> : vector<8x33xf32>
    %83 = tpu.matmul %80, %82, %cst_29 {dimension_numbers = #tpu.dot_dimension_numbers<[1], [0], [0], [1], [0, 0, 1, 1], [], []>} : vector<8x32xbf16>, vector<32x33xbf16>, vector<8x33xf32> -> vector<8x33xf32>
    %c0_30 = arith.constant 0 : index
    %c0_31 = arith.constant 0 : index
    %84 = vector.load %arg21[%c0_30, %c0_31] : memref<8x33xf32, #tpu.memory_space<vmem>>, vector<8x33xf32>
    tpu.vector_store %arg21[%c0_30, %c0_31], %83 {strides = array<i32>} : memref<8x33xf32, #tpu.memory_space<vmem>>, vector<8x33xf32>,
    %85 = vector.extract_strided_slice %83 {offsets = [0, 0], sizes = [8, 1], strides = [1, 1]} : vector<8x33xf32> to vector<8x1xf32>
    %c0_32 = arith.constant 0 : index
    %c0_33 = arith.constant 0 : index
    %c0_34 = arith.constant 0 : index
    %86 = vector.load %arg10[%c0_32, %c0_33, %c0_34] : memref<1x1x32xf32, #tpu.memory_space<vmem>>, vector<1x1x32xf32>
    %87 = vector.shape_cast %86 : vector<1x1x32xf32> to vector<1x32xf32>
    %c0_35 = arith.constant 0 : index
    %c0_36 = arith.constant 0 : index
    %c0_37 = arith.constant 0 : index
    %88 = vector.load %arg11[%c0_35, %c0_36, %c0_37] : memref<1x1x32xf32, #tpu.memory_space<vmem>>, vector<1x1x32xf32>
    %89 = vector.shape_cast %88 : vector<1x1x32xf32> to vector<32xf32>
    %90 = vector.shape_cast %89 : vector<32xf32> to vector<1x32xf32>
    %91 = vector.shape_cast %90 : vector<1x32xf32> to vector<1x32xf32>
    %92 = vector.broadcast %91 : vector<1x32xf32> to vector<8x32xf32>
    %93 = vector.shape_cast %87 : vector<1x32xf32> to vector<32xf32>
    %94 = vector.shape_cast %93 : vector<32xf32> to vector<1x32xf32>
    %95 = vector.broadcast %85 : vector<8x1xf32> to vector<8x32xf32>
    %96 = vector.broadcast %94 : vector<1x32xf32> to vector<8x32xf32>
    %97 = arith.mulf %95, %96 : vector<8x32xf32>
    %98 = arith.addf %92, %97 : vector<8x32xf32>
    %cst_38 = arith.constant 0.000000e+00 : f32
    %99 = vector.broadcast %cst_38 : f32 to vector<8x32xf32>
    %100 = arith.maximumf %98, %99 : vector<8x32xf32>
    %101 = math.absf %98 : vector<8x32xf32>
    %cst_39 = arith.constant 0.000000e+00 : f32
    %102 = vector.broadcast %cst_39 : f32 to vector<8x32xf32>
    %103 = arith.subf %102, %101 : vector<8x32xf32>
    %104 = math.exp %103 : vector<8x32xf32>
    %105 = math.log1p %104 : vector<8x32xf32>
    %106 = arith.addf %100, %105 : vector<8x32xf32>
    %c0_40 = arith.constant 0 : index
    %c0_41 = arith.constant 0 : index
    %c0_42 = arith.constant 0 : index
    %107 = vector.load %arg12[%c0_40, %c0_41, %c0_42] : memref<1x16x32xf32, #tpu.memory_space<vmem>>, vector<1x16x32xf32>
    %108 = vector.shape_cast %107 : vector<1x16x32xf32> to vector<16x32xf32>
    %109 = math.exp %108 : vector<16x32xf32>
    %cst_43 = arith.constant 0.000000e+00 : f32
    %110 = vector.broadcast %cst_43 : f32 to vector<16x32xf32>
    %111 = arith.subf %110, %109 : vector<16x32xf32>
    %c0_44 = arith.constant 0 : index
    %c0_45 = arith.constant 0 : index
    %112 = vector.load %arg19[%c0_44, %c0_45] : memref<8x32xf32, #tpu.memory_space<vmem>>, vector<8x32xf32>
    tpu.vector_store %arg19[%c0_44, %c0_45], %106 {strides = array<i32>} : memref<8x32xf32, #tpu.memory_space<vmem>>, vector<8x32xf32>,
    %113 = arith.mulf %106, %79 : vector<8x32xf32>
    %c0_46 = arith.constant 0 : index
    %c0_47 = arith.constant 0 : index
    %114 = vector.load %arg20[%c0_46, %c0_47] : memref<8x32xf32, #tpu.memory_space<vmem>>, vector<8x32xf32>
    tpu.vector_store %arg20[%c0_46, %c0_47], %113 {strides = array<i32>} : memref<8x32xf32, #tpu.memory_space<vmem>>, vector<8x32xf32>,
    %cst_48 = arith.constant 0.000000e+00 : f32
    %115 = vector.broadcast %cst_48 : f32 to vector<16x32xf32>
    %c0_i32_49 = arith.constant 0 : i32
    %c8_i32 = arith.constant 8 : i32
    %116 = arith.muli %c0_i32_49, %c8_i32 : i32
    %117 = tpu.assume_multiple %116, 8 : i32
    %118 = arith.index_cast %117 : i32 to index
    %c0_50 = arith.constant 0 : index
    %119 = vector.load %arg19[%118, %c0_50] : memref<8x32xf32, #tpu.memory_space<vmem>>, vector<8x32xf32>
    %120 = arith.index_cast %117 : i32 to index
    %c0_51 = arith.constant 0 : index
    %121 = vector.load %arg20[%120, %c0_51] : memref<8x32xf32, #tpu.memory_space<vmem>>, vector<8x32xf32>
    %122 = arith.index_cast %117 : i32 to index
    %c0_52 = arith.constant 0 : index
    %123 = vector.load %arg21[%122, %c0_52] : memref<8x33xf32, #tpu.memory_space<vmem>>, vector<8x33xf32>
    %124 = vector.extract_strided_slice %123 {offsets = [0, 1], sizes = [8, 16], strides = [1, 1]} : vector<8x33xf32> to vector<8x16xf32>
    %125 = vector.extract_strided_slice %123 {offsets = [0, 17], sizes = [8, 16], strides = [1, 1]} : vector<8x33xf32> to vector<8x16xf32>
    %126 = vector.shape_cast %119 : vector<8x32xf32> to vector<8x1x32xf32>
    %127 = vector.shape_cast %111 : vector<16x32xf32> to vector<1x16x32xf32>
    %128 = vector.broadcast %126 : vector<8x1x32xf32> to vector<8x16x32xf32>
    %129 = vector.broadcast %127 : vector<1x16x32xf32> to vector<8x16x32xf32>
    %130 = arith.mulf %128, %129 : vector<8x16x32xf32>
    %131 = math.exp %130 : vector<8x16x32xf32>
    %132 = vector.shape_cast %124 : vector<8x16xf32> to vector<8x16x1xf32>
    %133 = vector.shape_cast %121 : vector<8x32xf32> to vector<8x1x32xf32>
    %134 = vector.broadcast %132 : vector<8x16x1xf32> to vector<8x16x32xf32>
    %135 = vector.broadcast %133 : vector<8x1x32xf32> to vector<8x16x32xf32>
    %136 = arith.mulf %134, %135 : vector<8x16x32xf32>
    %137 = vector.extract_strided_slice %131 {offsets = [0, 0, 0], sizes = [1, 16, 32], strides = [1, 1, 1]} : vector<8x16x32xf32> to vector<1x16x32xf32>
    %138 = vector.shape_cast %137 : vector<1x16x32xf32> to vector<16x32xf32>
    %139 = arith.mulf %138, %115 : vector<16x32xf32>
    %140 = vector.extract_strided_slice %136 {offsets = [0, 0, 0], sizes = [1, 16, 32], strides = [1, 1, 1]} : vector<8x16x32xf32> to vector<1x16x32xf32>
    %141 = vector.shape_cast %140 : vector<1x16x32xf32> to vector<16x32xf32>
    %142 = arith.addf %139, %141 : vector<16x32xf32>
    %143 = vector.extract_strided_slice %131 {offsets = [1, 0, 0], sizes = [1, 16, 32], strides = [1, 1, 1]} : vector<8x16x32xf32> to vector<1x16x32xf32>
    %144 = vector.shape_cast %143 : vector<1x16x32xf32> to vector<16x32xf32>
    %145 = arith.mulf %144, %142 : vector<16x32xf32>
    %146 = vector.extract_strided_slice %136 {offsets = [1, 0, 0], sizes = [1, 16, 32], strides = [1, 1, 1]} : vector<8x16x32xf32> to vector<1x16x32xf32>
    %147 = vector.shape_cast %146 : vector<1x16x32xf32> to vector<16x32xf32>
    %148 = arith.addf %145, %147 : vector<16x32xf32>
    %149 = vector.extract_strided_slice %131 {offsets = [2, 0, 0], sizes = [1, 16, 32], strides = [1, 1, 1]} : vector<8x16x32xf32> to vector<1x16x32xf32>
    %150 = vector.shape_cast %149 : vector<1x16x32xf32> to vector<16x32xf32>
    %151 = arith.mulf %150, %148 : vector<16x32xf32>
    %152 = vector.extract_strided_slice %136 {offsets = [2, 0, 0], sizes = [1, 16, 32], strides = [1, 1, 1]} : vector<8x16x32xf32> to vector<1x16x32xf32>
    %153 = vector.shape_cast %152 : vector<1x16x32xf32> to vector<16x32xf32>
    %154 = arith.addf %151, %153 : vector<16x32xf32>
    %155 = vector.extract_strided_slice %131 {offsets = [3, 0, 0], sizes = [1, 16, 32], strides = [1, 1, 1]} : vector<8x16x32xf32> to vector<1x16x32xf32>
    %156 = vector.shape_cast %155 : vector<1x16x32xf32> to vector<16x32xf32>
    %157 = arith.mulf %156, %154 : vector<16x32xf32>
    %158 = vector.extract_strided_slice %136 {offsets = [3, 0, 0], sizes = [1, 16, 32], strides = [1, 1, 1]} : vector<8x16x32xf32> to vector<1x16x32xf32>
    %159 = vector.shape_cast %158 : vector<1x16x32xf32> to vector<16x32xf32>
    %160 = arith.addf %157, %159 : vector<16x32xf32>
    %161 = vector.extract_strided_slice %131 {offsets = [4, 0, 0], sizes = [1, 16, 32], strides = [1, 1, 1]} : vector<8x16x32xf32> to vector<1x16x32xf32>
    %162 = vector.shape_cast %161 : vector<1x16x32xf32> to vector<16x32xf32>
    %163 = arith.mulf %162, %160 : vector<16x32xf32>
    %164 = vector.extract_strided_slice %136 {offsets = [4, 0, 0], sizes = [1, 16, 32], strides = [1, 1, 1]} : vector<8x16x32xf32> to vector<1x16x32xf32>
    %165 = vector.shape_cast %164 : vector<1x16x32xf32> to vector<16x32xf32>
    %166 = arith.addf %163, %165 : vector<16x32xf32>
    %167 = vector.extract_strided_slice %131 {offsets = [5, 0, 0], sizes = [1, 16, 32], strides = [1, 1, 1]} : vector<8x16x32xf32> to vector<1x16x32xf32>
    %168 = vector.shape_cast %167 : vector<1x16x32xf32> to vector<16x32xf32>
    %169 = arith.mulf %168, %166 : vector<16x32xf32>
    %170 = vector.extract_strided_slice %136 {offsets = [5, 0, 0], sizes = [1, 16, 32], strides = [1, 1, 1]} : vector<8x16x32xf32> to vector<1x16x32xf32>
    %171 = vector.shape_cast %170 : vector<1x16x32xf32> to vector<16x32xf32>
    %172 = arith.addf %169, %171 : vector<16x32xf32>
    %173 = vector.extract_strided_slice %131 {offsets = [6, 0, 0], sizes = [1, 16, 32], strides = [1, 1, 1]} : vector<8x16x32xf32> to vector<1x16x32xf32>
    %174 = vector.shape_cast %173 : vector<1x16x32xf32> to vector<16x32xf32>
    %175 = arith.mulf %174, %172 : vector<16x32xf32>
    %176 = vector.extract_strided_slice %136 {offsets = [6, 0, 0], sizes = [1, 16, 32], strides = [1, 1, 1]} : vector<8x16x32xf32> to vector<1x16x32xf32>
    %177 = vector.shape_cast %176 : vector<1x16x32xf32> to vector<16x32xf32>
    %178 = arith.addf %175, %177 : vector<16x32xf32>
    %179 = vector.extract_strided_slice %131 {offsets = [7, 0, 0], sizes = [1, 16, 32], strides = [1, 1, 1]} : vector<8x16x32xf32> to vector<1x16x32xf32>
    %180 = vector.shape_cast %179 : vector<1x16x32xf32> to vector<16x32xf32>
    %181 = arith.mulf %180, %178 : vector<16x32xf32>
    %182 = vector.extract_strided_slice %136 {offsets = [7, 0, 0], sizes = [1, 16, 32], strides = [1, 1, 1]} : vector<8x16x32xf32> to vector<1x16x32xf32>
    %183 = vector.shape_cast %182 : vector<1x16x32xf32> to vector<16x32xf32>
    %184 = arith.addf %181, %183 : vector<16x32xf32>
    %185 = vector.shape_cast %142 : vector<16x32xf32> to vector<1x16x32xf32>
    %186 = vector.shape_cast %148 : vector<16x32xf32> to vector<1x16x32xf32>
    %187 = vector.shape_cast %154 : vector<16x32xf32> to vector<1x16x32xf32>
    %188 = vector.shape_cast %160 : vector<16x32xf32> to vector<1x16x32xf32>
    %189 = vector.shape_cast %166 : vector<16x32xf32> to vector<1x16x32xf32>
    %190 = vector.shape_cast %172 : vector<16x32xf32> to vector<1x16x32xf32>
    %191 = vector.shape_cast %178 : vector<16x32xf32> to vector<1x16x32xf32>
    %192 = vector.shape_cast %184 : vector<16x32xf32> to vector<1x16x32xf32>
    %193 = tpu.concatenate %185, %186, %187, %188, %189, %190, %191, %192 in 0 : vector<1x16x32xf32>, vector<1x16x32xf32>, vector<1x16x32xf32>, vector<1x16x32xf32>, vector<1x16x32xf32>, vector<1x16x32xf32>, vector<1x16x32xf32>, vector<1x16x32xf32> -> vector<8x16x32xf32>
    %194 = vector.shape_cast %125 : vector<8x16xf32> to vector<8x16x1xf32>
    %195 = vector.broadcast %194 : vector<8x16x1xf32> to vector<8x16x32xf32>
    %196 = arith.mulf %193, %195 : vector<8x16x32xf32>
    %cst_53 = arith.constant dense<0.000000e+00> : vector<8x32xf32>
    %197 = vector.multi_reduction <add>, %196, %cst_53 [1] : vector<8x16x32xf32> to vector<8x32xf32>
    %198 = arith.index_cast %117 : i32 to index
    %c0_54 = arith.constant 0 : index
    %199 = vector.load %arg22[%198, %c0_54] : memref<8x32xf32, #tpu.memory_space<vmem>>, vector<8x32xf32>
    tpu.vector_store %arg22[%198, %c0_54], %197 {strides = array<i32>} : memref<8x32xf32, #tpu.memory_space<vmem>>, vector<8x32xf32>,
    %c1_i32_55 = arith.constant 1 : i32
    %c0_56 = arith.constant 0 : index
    %c0_57 = arith.constant 0 : index
    %200 = vector.load %arg22[%c0_56, %c0_57] : memref<8x32xf32, #tpu.memory_space<vmem>>, vector<8x32xf32>
    %c0_58 = arith.constant 0 : index
    %c0_59 = arith.constant 0 : index
    %c0_60 = arith.constant 0 : index
    %201 = vector.load %arg13[%c0_58, %c0_59, %c0_60] : memref<1x1x32xf32, #tpu.memory_space<vmem>>, vector<1x1x32xf32>
    %202 = vector.shape_cast %201 : vector<1x1x32xf32> to vector<32xf32>
    %203 = vector.shape_cast %202 : vector<32xf32> to vector<1x32xf32>
    %204 = vector.broadcast %203 : vector<1x32xf32> to vector<8x32xf32>
    %205 = arith.mulf %79, %204 : vector<8x32xf32>
    %206 = arith.addf %200, %205 : vector<8x32xf32>
    %cst_61 = arith.constant 0.000000e+00 : f32
    %207 = vector.broadcast %cst_61 : f32 to vector<8x32xf32>
    %208 = arith.subf %207, %24 : vector<8x32xf32>
    %209 = math.exp %208 : vector<8x32xf32>
    %cst_62 = arith.constant 1.000000e+00 : f32
    %210 = vector.broadcast %cst_62 : f32 to vector<8x32xf32>
    %211 = arith.addf %210, %209 : vector<8x32xf32>
    %cst_63 = arith.constant 1.000000e+00 : f32
    %212 = vector.broadcast %cst_63 : f32 to vector<8x32xf32>
    %213 = arith.divf %212, %211 : vector<8x32xf32>
    %214 = arith.mulf %24, %213 : vector<8x32xf32>
    %215 = arith.mulf %206, %214 : vector<8x32xf32>
    %216 = arith.truncf %215 : vector<8x32xf32> to vector<8x32xbf16>
    %c0_64 = arith.constant 0 : index
    %c0_65 = arith.constant 0 : index
    %c0_66 = arith.constant 0 : index
    %217 = vector.load %arg14[%c0_64, %c0_65, %c0_66] : memref<1x32x16xbf16, #tpu.memory_space<vmem>>, vector<1x32x16xbf16>
    %218 = vector.shape_cast %217 : vector<1x32x16xbf16> to vector<32x16xbf16>
    %cst_67 = arith.constant dense<0.000000e+00> : vector<8x16xf32>
    %219 = tpu.matmul %216, %218, %cst_67 {dimension_numbers = #tpu.dot_dimension_numbers<[1], [0], [0], [1], [0, 0, 1, 1], [], []>} : vector<8x32xbf16>, vector<32x16xbf16>, vector<8x16xf32> -> vector<8x16xf32>
    %220 = arith.addf %219, %3 : vector<8x16xf32>
    %c0_68 = arith.constant 0 : index
    %c0_69 = arith.constant 0 : index
    %221 = vector.load %arg18[%c0_68, %c0_69] : memref<8x16xf32, #tpu.memory_space<vmem>>, vector<8x16xf32>
    tpu.vector_store %arg18[%c0_68, %c0_69], %220 {strides = array<i32>} : memref<8x16xf32, #tpu.memory_space<vmem>>, vector<8x16xf32>,
    %c1_i32_70 = arith.constant 1 : i32
    %222 = arith.cmpi eq, %arg1, %c1_i32_70 : i32
    %223 = arith.extui %222 : i1 to i32
    %c0_i32_71 = arith.constant 0 : i32
    %224 = arith.cmpi ne, %223, %c0_i32_71 : i32
    scf.if %224 {
      %c0_72 = arith.constant 0 : index
      %c0_73 = arith.constant 0 : index
      %225 = vector.load %arg15[%c0_72, %c0_73] : memref<1x16xf32, #tpu.memory_space<vmem>>, vector<1x16xf32>
      %226 = vector.shape_cast %225 : vector<1x16xf32> to vector<16xf32>
      %227 = arith.mulf %220, %220 : vector<8x16xf32>
      %cst_74 = arith.constant dense<0.000000e+00> : vector<8xf32>
      %228 = vector.multi_reduction <add>, %227, %cst_74 [1] : vector<8x16xf32> to vector<8xf32>
      %229 = vector.shape_cast %228 : vector<8xf32> to vector<8x1xf32>
      %cst_75 = arith.constant 1.600000e+01 : f32
      %230 = vector.broadcast %cst_75 : f32 to vector<8x1xf32>
      %231 = arith.divf %229, %230 : vector<8x1xf32>
      %cst_76 = arith.constant 9.99999974E-6 : f32
      %232 = vector.broadcast %cst_76 : f32 to vector<8x1xf32>
      %233 = arith.addf %231, %232 : vector<8x1xf32>
      %234 = math.rsqrt %233 : vector<8x1xf32>
      %235 = vector.broadcast %234 : vector<8x1xf32> to vector<8x16xf32>
      %236 = arith.mulf %220, %235 : vector<8x16xf32>
      %237 = vector.shape_cast %226 : vector<16xf32> to vector<1x16xf32>
      %238 = vector.broadcast %237 : vector<1x16xf32> to vector<8x16xf32>
      %239 = arith.mulf %236, %238 : vector<8x16xf32>
      %c0_77 = arith.constant 0 : index
      %c0_78 = arith.constant 0 : index
      %240 = vector.load %arg16[%c0_77, %c0_78] : memref<16x4xbf16, #tpu.memory_space<vmem>>, vector<16x4xbf16>
      %241 = vector.extract_strided_slice %239 {offsets = [7, 0], sizes = [1, 16], strides = [1, 1]} : vector<8x16xf32> to vector<1x16xf32>
      %242 = arith.truncf %241 : vector<1x16xf32> to vector<1x16xbf16>
      %cst_79 = arith.constant dense<0.000000e+00> : vector<1x4xf32>
      %243 = tpu.matmul %242, %240, %cst_79 {dimension_numbers = #tpu.dot_dimension_numbers<[1], [0], [0], [1], [0, 0, 1, 1], [], []>} : vector<1x16xbf16>, vector<16x4xbf16>, vector<1x4xf32> -> vector<1x4xf32>
      %c0_80 = arith.constant 0 : index
      %c0_81 = arith.constant 0 : index
      %c0_82 = arith.constant 0 : index
      %244 = vector.load %arg17[%c0_80, %c0_81, %c0_82] : memref<1x1x4xf32, #tpu.memory_space<vmem>>, vector<1x1x4xf32>
      %245 = vector.shape_cast %244 : vector<1x1x4xf32> to vector<1x4xf32>
      %246 = vector.shape_cast %243 : vector<1x4xf32> to vector<1x1x4xf32>
      tpu.vector_store %arg17[%c0_80, %c0_81, %c0_82], %246 {strides = array<i32>} : memref<1x1x4xf32, #tpu.memory_space<vmem>>, vector<1x1x4xf32>,
    } else {
    }
    return
  }
  func.func @transform_0(%arg0: i32, %arg1: i32) -> (i32, i32, i32) {
    %c0_i32 = arith.constant 0 : i32
    %c0_i32_0 = arith.constant 0 : i32
    %c0_i32_1 = arith.constant 0 : i32
    return %arg0, %c0_i32, %c0_i32_0 : i32, i32, i32
  }
  func.func @transform_1(%arg0: i32, %arg1: i32) -> (i32, i32) {
    %c0_i32 = arith.constant 0 : i32
    %c0_i32_0 = arith.constant 0 : i32
    %c0_i32_1 = arith.constant 0 : i32
    return %c0_i32, %c0_i32_0 : i32, i32
  }
  func.func @transform_2(%arg0: i32, %arg1: i32) -> (i32, i32) {
    %c0_i32 = arith.constant 0 : i32
    %c0_i32_0 = arith.constant 0 : i32
    %c0_i32_1 = arith.constant 0 : i32
    return %c0_i32, %c0_i32_0 : i32, i32
  }
  func.func @transform_3(%arg0: i32, %arg1: i32) -> (i32, i32, i32) {
    %c0_i32 = arith.constant 0 : i32
    %c0_i32_0 = arith.constant 0 : i32
    %c0_i32_1 = arith.constant 0 : i32
    return %arg1, %c0_i32, %c0_i32_0 : i32, i32, i32
  }
  func.func @transform_4(%arg0: i32, %arg1: i32) -> (i32, i32, i32) {
    %c0_i32 = arith.constant 0 : i32
    %c0_i32_0 = arith.constant 0 : i32
    %c0_i32_1 = arith.constant 0 : i32
    return %arg1, %c0_i32, %c0_i32_0 : i32, i32, i32
  }
  func.func @transform_5(%arg0: i32, %arg1: i32) -> (i32, i32, i32) {
    %c0_i32 = arith.constant 0 : i32
    %c0_i32_0 = arith.constant 0 : i32
    %c0_i32_1 = arith.constant 0 : i32
    return %arg1, %c0_i32, %c0_i32_0 : i32, i32, i32
  }
  func.func @transform_6(%arg0: i32, %arg1: i32) -> (i32, i32, i32) {
    %c0_i32 = arith.constant 0 : i32
    %c0_i32_0 = arith.constant 0 : i32
    %c0_i32_1 = arith.constant 0 : i32
    return %arg1, %c0_i32, %c0_i32_0 : i32, i32, i32
  }
  func.func @transform_7(%arg0: i32, %arg1: i32) -> (i32, i32, i32) {
    %c0_i32 = arith.constant 0 : i32
    %c0_i32_0 = arith.constant 0 : i32
    %c0_i32_1 = arith.constant 0 : i32
    return %arg1, %c0_i32, %c0_i32_0 : i32, i32, i32
  }
  func.func @transform_8(%arg0: i32, %arg1: i32) -> (i32, i32, i32) {
    %c0_i32 = arith.constant 0 : i32
    %c0_i32_0 = arith.constant 0 : i32
    %c0_i32_1 = arith.constant 0 : i32
    return %arg1, %c0_i32, %c0_i32_0 : i32, i32, i32
  }
  func.func @transform_9(%arg0: i32, %arg1: i32) -> (i32, i32, i32) {
    %c0_i32 = arith.constant 0 : i32
    %c0_i32_0 = arith.constant 0 : i32
    %c0_i32_1 = arith.constant 0 : i32
    return %arg1, %c0_i32, %c0_i32_0 : i32, i32, i32
  }
  func.func @transform_10(%arg0: i32, %arg1: i32) -> (i32, i32, i32) {
    %c0_i32 = arith.constant 0 : i32
    %c0_i32_0 = arith.constant 0 : i32
    %c0_i32_1 = arith.constant 0 : i32
    return %arg1, %c0_i32, %c0_i32_0 : i32, i32, i32
  }
  func.func @transform_11(%arg0: i32, %arg1: i32) -> (i32, i32, i32) {
    %c0_i32 = arith.constant 0 : i32
    %c0_i32_0 = arith.constant 0 : i32
    %c0_i32_1 = arith.constant 0 : i32
    return %arg1, %c0_i32, %c0_i32_0 : i32, i32, i32
  }
  func.func @transform_12(%arg0: i32, %arg1: i32) -> (i32, i32, i32) {
    %c0_i32 = arith.constant 0 : i32
    %c0_i32_0 = arith.constant 0 : i32
    %c0_i32_1 = arith.constant 0 : i32
    return %arg1, %c0_i32, %c0_i32_0 : i32, i32, i32
  }
  func.func @transform_13(%arg0: i32, %arg1: i32) -> (i32, i32) {
    %c0_i32 = arith.constant 0 : i32
    %c0_i32_0 = arith.constant 0 : i32
    %c0_i32_1 = arith.constant 0 : i32
    return %c0_i32, %c0_i32_0 : i32, i32
  }
  func.func @transform_14(%arg0: i32, %arg1: i32) -> (i32, i32) {
    %c0_i32 = arith.constant 0 : i32
    %c0_i32_0 = arith.constant 0 : i32
    %c0_i32_1 = arith.constant 0 : i32
    return %c0_i32, %c0_i32_0 : i32, i32
  }
  func.func @transform_15(%arg0: i32, %arg1: i32) -> (i32, i32, i32) {
    %c0_i32 = arith.constant 0 : i32
    %c0_i32_0 = arith.constant 0 : i32
    %c0_i32_1 = arith.constant 0 : i32
    return %arg0, %c0_i32, %c0_i32_0 : i32, i32, i32
  }
}

</mosaic_0001>

<bundles_post_ra>
// kernel: tpu_custom_call.1
= control target key start
LH: loop header
LB: loop body
LE: loop exit
PB: predicated region body
PF: predicated region fallthrough
CT: control target
= control target key end

     0   :  { %s2937_s0 = inlined_call_operand.vmem [shape: f32[2,8,4], index: 0, kind: input, shape index: {}]   ;;  %s2938_s1 = inlined_call_operand.hbm [shape: f32[4,16], index: 1, kind: input, shape index: {}]   ;;  %s2939_s2 = inlined_call_operand.hbm [shape: f32[1,16], index: 2, kind: input, shape index: {}]   ;;  %s2940_s3 = inlined_call_operand.vmem [shape: f32[2,1,16], index: 3, kind: input, shape index: {}]   ;;  %s2941_s4 = inlined_call_operand.hbm [shape: bf16[2,16,64], index: 4, kind: input, shape index: {}]   ;;  %s2942_s5 = inlined_call_operand.hbm [shape: f32[2,4,32], index: 5, kind: input, shape index: {}]   ;;  %s2943_s6 = inlined_call_operand.vmem [shape: f32[2,1,32], index: 6, kind: input, shape index: {}]   ;;  %s2944_s7 = inlined_call_operand.vmem [shape: bf16[2,32,33], index: 7, kind: input, shape index: {}]   ;;  %s2945_s8 = inlined_call_operand.vmem [shape: f32[2,1,32], index: 8, kind: input, shape index: {}]   ;;  %s2946_s9 = inlined_call_operand.vmem [shape: f32[2,1,32], index: 9, kind: input, shape index: {}]   ;;  %s2947_s10 = inlined_call_operand.vmem [shape: f32[2,16,32], index: 10, kind: input, shape index: {}]   ;;  %s2948_s11 = inlined_call_operand.vmem [shape: f32[2,1,32], index: 11, kind: input, shape index: {}]   ;;  %s2949_s12 = inlined_call_operand.vmem [shape: bf16[2,32,16], index: 12, kind: input, shape index: {}]   ;;  %s2950_s13 = inlined_call_operand.vmem [shape: f32[1,16], index: 13, kind: input, shape index: {}]   ;;  %s2951_s14 = inlined_call_operand.vmem [shape: bf16[16,4], index: 14, kind: input, shape index: {}]   ;;  %s2952_s15 = inlined_call_operand.hbm [shape: f32[2,1,4], index: 15, kind: output, shape index: {}]  }
   0x1   :  { %2969 = sst [smem:[#allocation32_spill]] %s2937_s0 }
   0x2   :  { %2970 = sst [smem:[#allocation33_spill]] %s2938_s1 }
   0x3   :  { %2971 = sst [smem:[#allocation34_spill]] %s2939_s2 }
   0x4   :  { %2972 = sst [smem:[#allocation35_spill]] %s2940_s3 }
   0x5   :  { %2973 = sst [smem:[#allocation36_spill]] %s2941_s4 }
   0x6   :  { %2974 = sst [smem:[#allocation37_spill]] %s2942_s5 }
   0x7   :  { %2975 = sst [smem:[#allocation38_spill]] %s2943_s6 }
   0x8   :  { %2976 = sst [smem:[#allocation39_spill]] %s2944_s7 }
   0x9   :  { %2977 = sst [smem:[#allocation40_spill]] %s2945_s8 }
   0xa   :  { %2978 = sst [smem:[#allocation41_spill]] %s2946_s9 }
   0xb   :  { %2979 = sst [smem:[#allocation42_spill]] %s2947_s10 }
   0xc   :  { %2980 = sst [smem:[#allocation43_spill]] %s2948_s11 }
   0xd   :  { %2981 = sst [smem:[#allocation44_spill]] %s2949_s12 }
   0xe   :  { %2982 = sst [smem:[#allocation45_spill]] %s2950_s13 }
   0xf   :  { %2983 = sst [smem:[#allocation46_spill]] %s2951_s14 }
  0x10   :  { %2984 = sst [smem:[#allocation47_spill]] %s2952_s15 }
  0x11   :  { %20 = vsyncpa [#allocation8], 0 }
  0x12   :  { %21 = vsyncpa [#allocation11], 0 }
  0x13   :  { %22 = vsyncpa [#allocation9], 0 }
  0x14   :  { %24 = vsyncpa [#allocation9 + $0x1], 0  ;;  %s2396_s18 = smov 0   ;;  %s2398_s19 = smov 0  }
  0x15   :  { %s2400_s20 = smov 0   ;;  %s2402_s21 = smov 0  }
  0x16   :  { %s2404_s22 = smov 0   ;;  %s2406_s23 = smov 0  }
  0x17   :  { %s2408_s24 = smov 0   ;;  %s2410_s25 = smov 0  }
  0x18   :  { %s2412_s26 = smov 0   ;;  %s2414_s27 = smov 0  }
  0x19   :  { %s2416_s28 = smov 0  }
  0x1a LB: > { %2985 = sst [smem:[#allocation19_spill]] %s2263_s18  ;;  %s2450_s29 = sadd.s32 4294967295, %s2303_s28   ;;  %s2303_s28 = sphi %s2416_s28, %s30_s28   ;;  %s2299_s27 = sphi %s2414_s27, %s3055_s27   ;;  %s2295_s26 = sphi %s2412_s26, %s3048_s26   ;;  %s2291_s25 = sphi %s2410_s25, %s3047_s25   ;;  %s2287_s24 = sphi %s2408_s24, %s3054_s24   ;;  %s2283_s23 = sphi %s2406_s23, %s3045_s23   ;;  %s2279_s22 = sphi %s2404_s22, %s3053_s22   ;;  %s2275_s21 = sphi %s2402_s21, %s3052_s21   ;;  %s2271_s20 = sphi %s2400_s20, %s3051_s20   ;;  %s2267_s19 = sphi %s2398_s19, %s3050_s19   ;;  %s2263_s18 = sphi %s2396_s18, %s3043_s18  }
  0x1b   : > { %2986 = sst [smem:[#allocation20_spill]] %s2267_s19  ;;  %s1764_s30 = sadd.s32 4294967294, %s2303_s28  }
  0x1c   : > { %2987 = sst [smem:[#allocation21_spill]] %s2283_s23  ;;  %p150_p0 = scmp.ne.s32.totalorder %s2283_s23, %s2279_s22 }
  0x1d   : > { %2988 = sst [smem:[#allocation22_spill]] %s2287_s24  ;;  %p151_p1 = scmp.eq.s32.totalorder %s2303_s28, 0 }
  0x1e   : > { %2989 = sst [smem:[#allocation23_spill]] %s2291_s25  ;;  %p156_p2 = scmp.ne.s32.totalorder %s2279_s22, %s2275_s21 }
  0x1f   : > { %2990 = sst [smem:[#allocation24_spill]] %s2295_s26  ;;  %p157_p3 = scmp.eq.s32.totalorder %s2450_s29, 0 }
  0x20   : > { %2991 = sst [smem:[#allocation25_spill]] %s2299_s27  ;;  %p2460_p4 = por %p151_p1, %p150_p0 }
  0x21   : > { %2992 = sst [smem:[#allocation26_spill]] %s2303_s28  ;;  %p429_p5 = scmp.ne.s32.totalorder %s2271_s20, %s2267_s19 }
  0x22   : > { %p2468_p6 = por %p157_p3, %p156_p2  ;;  %p430_p7 = scmp.eq.s32.totalorder %s2450_s29, 3 }
  0x23   : > { %p435_p8 = scmp.ne.s32.totalorder %s2267_s19, %s2263_s18  ;;  %p436_p9 = scmp.eq.s32.totalorder %s1764_s30, 3 }
  0x24   : > { %p2475_p10 = por %p430_p7, %p429_p5  ;;  %p1765_p11 = scmp.ge.s32.totalorder %s2303_s28, 1 }
  0x25   : > { %p2480_p12 = por %p436_p9, %p435_p8  ;;  %p443_p13 = scmp.lt.s32.totalorder %s2303_s28, 5 }
  0x26   : > { %s2995_s21 = scalar_select %p2475_p10, 1, 0 }
  0x27   : > { %s2997_s17 = scalar_select %p2480_p12, 1, 0 }
  0x28   : > { %2996 = sst [smem:[#allocation27_spill]] %s2995_s21  ;;  %p2488_p0 = pnand %p1765_p11, %p443_p13 }
  0x29   : > { %2998 = sst [smem:[#allocation28_spill]] %s2997_s17  ;;  %s2305_s18 = smov [#allocation7]  }
  0x2a   : > { %s2999_s1 = sld [smem:[#allocation33_spill]]  ;;  %p1842_p1 = pneg %p2488_p0 }
  0x2b   : > { %s457_s21 = sshll.u32 %s2305_s18, 4  ;;  %p1862_p2 = scmp.lt.s32.totalorder %s2303_s28, 4  ;;  %s458_s21 = int_to_ptr.vmem [resolvable:$true] %s457_s21 }
  0x2c   : > { %p2497_p5 = pnand %p1842_p1, %p157_p3  ;;  %s39_s18 = sadd.s32 1, %s2295_s26 }
  0x2d   : > { %p2503_p7 = pnand %p1862_p2, %p2460_p4  ;;  %p40_p8 = scmp.ge.s32.totalorder %s39_s18, 2 }
  0x2e   : > { %s499_s17 = sand.u32 1, %s2303_s28   ;;  %s501_s11 = sand.u32 1, %s2283_s23  }
  0x2f   : > { %s3057_s18 = smov (%p40_p8, %s39_s18), 0  ;;  %s1769_s10 = sshll.u32 %s501_s11, 3 }
  0x30   : > { %s455_s12 = sshll.u32 %s2999_s1, 4  ;;  %s42_s1 = sadd.s32 1, %s2299_s27  ;;  %s456_s12 = int_to_ptr.hbm [resolvable:$true] %s455_s12 }
  0x31   : > { %1845 = dma.hbm_to_vmem [thread:$0]  (!%p2497_p5), %s456_s12, 64, %s458_s21, [#allocation8]  }
  0x32   : > { %3003 = sst [smem:[#allocation29_spill]] %s3057_s18  ;;  %s3059_s1 = smov (!%p40_p8, %s42_s1), %s2299_s27 }
  0x33   : > { %s140_s15 = ssub.s32 %s2295_s26, %s3057_s18  ;;  %p44_p4 = scmp.ge.s32.totalorder %s3059_s1, 2 }
  0x34   : > { %p141_p9 = scmp.eq.s32.totalorder %s140_s15, 0  ;;  %s1818_s9 = sshll.u32 %s2295_s26, 3 }
  0x35   : > { %s3061_s1 = smov (%p44_p4, %s3059_s1), 0  ;;  %s3005_s12 = sadd.s32 1, %s2283_s23 }
  0x36   : > { %3004 = sst [smem:[#allocation30_spill]] %s3061_s1  ;;  %s416_s28 = ssub.s32 %s2299_s27, %s3061_s1 }
  0x37   : > { %s2524_s21 = scalar_select %p141_p9, %s2283_s23, %s3005_s12  }
  0x38   : > { %s3007_s4 = sld [smem:[#allocation36_spill]]  ;;  %p417_p11 = scmp.eq.s32.totalorder %s416_s28, 0 }
  0x39   : > { %3006 = sst [smem:[#allocation31_spill]] %s2524_s21  ;;  %s503_s18 = scalar_lea.vmem [#allocation12], %s1769_s10 }
  0x3a   : > { %s511_s15 = sshll.u32 %s503_s18, 4  ;;  %s3008_s0 = sadd.s32 1, %s2271_s20  ;;  %s512_s15 = int_to_ptr.vmem [resolvable:$true] %s511_s15 }
  0x3b   : > { %s2534_s24 = scalar_select %p417_p11, %s2271_s20, %s3008_s0  }
  0x3c   : > { %s3009_s2 = sld [smem:[#allocation34_spill]]  ;;  %s500_s1 = scalar_lea.sflag [#allocation8], %s499_s17 }
  0x3d   : > { %s2306_s27 = smov 64   ;;  %s2307_s7 = smov 4  }
  0x3e   : > { %s508_s6 = scalar_lea.hbm %s3007_s4, %s1818_s9  ;;  %s1772_s9 = sshll.u32 %s501_s11, 2 }
  0x3f   : > { %s509_s3 = sshll.u32 %s508_s6, 4  ;;  %s2308_s6 = smov [#allocation10]   ;;  %s510_s3 = int_to_ptr.hbm [resolvable:$true] %s509_s3 }
  0x40   : > { %1852 = dma.hbm_to_vmem [thread:$0]  (!%p2503_p7), %s510_s3, 128, %s512_s15, %s500_s1, %s2306_s27, %s2306_s27, %s2307_s7  }
  0x41   : > { %s469_s8 = sshll.u32 %s2308_s6, 4  ;;  %s1773_s0 = sshll.u32 %s2295_s26, 2  ;;  %s470_s8 = int_to_ptr.vmem [resolvable:$true] %s469_s8 }
  0x42   : > { %s467_s12 = sshll.u32 %s3009_s2, 4  ;;  %s525_s10 = scalar_lea.vmem [#allocation13], %s1772_s9  ;;  %s468_s12 = int_to_ptr.hbm [resolvable:$true] %s467_s12 }
  0x43   : > { %1848 = dma.hbm_to_vmem [thread:$0]  (!%p2497_p5), %s468_s12, 16, %s470_s8, [#allocation11]  }
  0x44   : > { %s533_s28 = sshll.u32 %s525_s10, 4  ;;  %s3010_s5 = sld [smem:[#allocation37_spill]]  ;;  %s534_s28 = int_to_ptr.vmem [resolvable:$true] %s533_s28 }
  0x48   : > { %590 = sbr.rel (%p2488_p0) target bundleno = 1463 (0x5b7), region = 80 }
  0x4a   : > { %s529_s19 = scalar_lea.hbm %s3010_s5, %s1773_s0 }
  0x4b   : > { %s531_s25 = sshll.u32 %s529_s19, 4  ;;  %s532_s25 = int_to_ptr.hbm [resolvable:$true] %s531_s25 }
  0x4c   : > { %1855 = dma.hbm_to_vmem [thread:$0]  (!%p2503_p7), %s532_s25, 64, %s534_s28, %s500_s1  }
  0x4d   : > { %2246 = dma.done.wait (%p157_p3), [#allocation8], 64  }
  0x4e   : > { %2248 = vsyncadd (%p157_p3), [#allocation8], 4294967232 }
  0x4f   : > { %2250 = dma.done.wait (%p157_p3), [#allocation11], 16  }
  0x50   : > { %2252 = vsyncadd (%p157_p3), [#allocation11], 4294967280  ;;  %s602_s3 = sand.u32 1, %s2450_s29   ;;  %s604_s1 = sand.u32 1, %s2279_s22  }
  0x51   : > { %s2561_s4 = sshll.u32 %s604_s1, 3  ;;  %s603_s11 = scalar_lea.sflag [#allocation8], %s602_s3 }
  0x52   : > { %2254 = dma.done.wait (%p2468_p6), %s603_s11, 192  }
  0x53   : > { %2256 = vsyncadd (%p2468_p6), %s603_s11, 4294967104  ;;  %s3011_s17 = sld [smem:[#allocation20_spill]]  ;;  %s2568_s16 = sshll.u32 %s604_s1, 2 }
  0x54   : > { %s3012_s30 = sld [smem:[#allocation23_spill]]  ;;  %s616_s5 = scalar_lea.vmem [#allocation13], %s2568_s16 }
  0x55   : > { %s3013_s14 = sld [smem:[#allocation22_spill]] }
  0x56   : > { %s3014_s6 = sld [smem:[#allocation32_spill]] }
  0x57   : > { %s3017_s15 = sld [smem:[#allocation39_spill]] }
  0x58   : > { %s3018_s26 = sld [smem:[#allocation40_spill]] }
  0x59   : > { %s3019_s7 = sld [smem:[#allocation41_spill]] }
  0x5a   : > { %p702_p3 = scmp.lt.s32.totalorder %s3012_s30, 1  ;;  %s3020_s10 = sld [smem:[#allocation42_spill]] }
  0x5b   : > { %p706_p13 = scmp.lt.s32.totalorder %s3013_s14, 1  ;;  %s3021_s25 = sld [smem:[#allocation43_spill]] }
  0x5c   : > { %s3063_s30 = smov (!%p702_p3, %s3012_s30), 1  ;;  %s3022_s11 = sld [smem:[#allocation44_spill]] }
  0x5d   : > { %s2575_s29 = scalar_select %p706_p13, %s3013_s14, 1 }
  0x5e   : > { %s1779_s13 = sshll.u32 %s3063_s30, 3  ;;  %p1786_p6 = scmp.ne.s32.totalorder %s3013_s14, 0 }
  0x5f   : > { %s705_s8 = scalar_lea.vmem %s3014_s6, %s1779_s13  ;;  %s1819_s1 = sshll.u32 %s2575_s29, 4 }
  0x60   : > { %s2592_s2 = scalar_lea.vmem %s3017_s15, %s1819_s1  ;;  %s719_s21 = scalar_lea.vmem %s3018_s26, %s2575_s29 }
  0x61   : > { %s722_s6 = scalar_lea.vmem %s3019_s7, %s2575_s29  ;;  %s2605_s28 = scalar_lea.vmem %s3020_s10, %s1819_s1 }
  0x62   : > { %s730_s3 = scalar_lea.vmem %s3021_s25, %s2575_s29  ;;  %s2614_s23 = scalar_lea.vmem %s3022_s11, %s1819_s1 }
  0x63   : > { %s3023_s26 = sand.u32 1, %s3011_s17   ;;  %740 = sbr.rel (%p1786_p6) target bundleno = 239 (0xef), region = 100 }
  0x64   : > { %s2619_s30 = scalar_lea.vmem [#allocation14], %s3023_s26 }
  0x68   : > { %v741_v0 = vld [vmem:[%s705_s8] sm:$0xff]  ;;  %v2309_v1 = vmov 0   ;;  %v2310_v2 = vmov 2   ;;  %v2311_v3 = vmov 1   ;;  %v2312_v4 = vmov 3  }
  0x69   : > { %1965 = vset.pattern.permute.xlu0 %v2309_v1  ;;  %1967 = vset.pattern.permute.xlu1 %v2310_v2  ;;  %v742_v5 = vld [vmem:[#allocation7] sm:$0xf]  ;;  %v1970_v9 = vld [vmem:[#allocation10] ss:$0 sm:$0xff]  ;;  %vm776_vm0 = vcmask 130048  }
  0x6a   : > { %749 = vperm.xlu0 %1965, %v741_v0   ;;  %763 = vperm.xlu1 %1967, %v741_v0   ;;  %v752_v8 = vperm.slane %v742_v5, 0  ;;  %v759_v11 = vperm.slane %v742_v5, 1  ;;  %v766_v12 = vperm.slane %v742_v5, 2  ;;  %v773_v13 = vperm.slane %v742_v5, 3 }
  0x72   : > { %1966 = vset.pattern.permute.xlu0 %v2311_v3  ;;  %1968 = vset.pattern.permute.xlu1 %v2312_v4 }
  0x73   : > { %756 = vperm.xlu0 %1966, %v741_v0   ;;  %770 = vperm.xlu1 %1968, %v741_v0  }
  0x7b   : > { %1969 = vset.pattern.permute.xlu0 %v2312_v4 }
  0xdc   : > { %v750_v6 = vpop.permute.xlu0 %749  ;;  %v764_v7 = vpop.permute.xlu1 %763 }
  0xdd   : > { %v753_v10 = vmul.f32 %v752_v8, %v750_v6  ;;  %v767_v18 = vmul.f32 %v766_v12, %v764_v7 }
  0xdf   : > { %v754_v16 = vadd.f32 %v1970_v9, %v753_v10 }
  0xe5   : > { %v757_v14 = vpop.permute.xlu0 %756  ;;  %v771_v15 = vpop.permute.xlu1 %770 }
  0xe6   : > { %v760_v17 = vmul.f32 %v759_v11, %v757_v14  ;;  %v774_v20 = vmul.f32 %v773_v13, %v771_v15 }
  0xe8   : > { %v761_v19 = vadd.f32 %v760_v17, %v754_v16 }
  0xea   : > { %v768_v21 = vadd.f32 %v767_v18, %v761_v19 }
  0xec   : > { %v775_v22 = vadd.f32 %v774_v20, %v768_v21 }
  0xee   : > { %777 = vst.msk [vmem:[#allocation2] sm:$0xff] %vm776_vm0, %v775_v22 }
  0xef PF: > { %vm781_vm1 = vcmask 130048   ;;  %v2313_v26 = vmov 16.0   ;;  %s3024_s17 = scalar_lea.vmem [#allocation12], %s2561_s4  ;;  %s3025_s8 = sld [smem:[#allocation35_spill]]  ;;  %v1824_v48 = vld [vmem:[%s2592_s2 + $0x8] sm:$0xff]  ;;  %v1823_v49 = vld [vmem:[%s2592_s2] sm:$0xff]  ;;  %v834_v50 = vlaneseq }
  0xf0   : > { %1997 = vrcp.f32 %v2313_v26  ;;  %v1822_v30 = vld [vmem:[%s3024_s17] sm:$0xff]  ;;  %909 = vmatpush.bf16.msra.mxu1 %v1824_v48  ;;  %v836_v52 = vld [vmem:[%s616_s5] sm:$0xf]  ;;  %s3027_s16 = sld [smem:[#allocation38_spill]]  ;;  %v2314_v12 = vmov 0   ;;  %vm899_vm13 = vcmask 261120  }
  0xf1   : > { %828 = vmatpush.bf16.msra.mxu0 %v1822_v30  ;;  %v2636_v51 = vshrl.u32 %v834_v50, 7  ;;  %v844_v54 = vperm.slane %v836_v52, 0  ;;  %v850_v58 = vperm.slane %v836_v52, 1  ;;  %v856_v63 = vperm.slane %v836_v52, 2  ;;  %1971 = vset.pattern.permute.xlu0 %v2314_v12  ;;  %s2315_s7 = smov 96  }
  0xf2   : > { %v859_v2 = vperm.slane %v836_v52, 3  ;;  %vm916_vm14 = vcmask 269312  }
  0xf3   : > { %vm841_vm6 = vcmp.ge.s32.totalorder %v2636_v51, 3  ;;  %vm847_vm7 = vcmp.ge.s32.totalorder %v2636_v51, 2  ;;  %vm853_vm8 = vcmp.ge.s32.totalorder %v2636_v51, 1 }
  0xf4   : > { %910 = vmatpush.bf16.msra.mxu1 %v1823_v49 }
  0xf5   : > { %v778_v23 = vld [vmem:[#allocation2] sm:$0xff]  ;;  %s3026_s1 = scalar_lea.vmem %s3025_s8, %s2575_s29 }
  0xf6   : > { %v780_v24 = vmul.f32 %v778_v23, %v778_v23  ;;  %v1998_v27 = vpop.eup %1997  ;;  %v1992_v43 = vld [vmem:[%s3026_s1] ss:$0 sm:$0xff]  ;;  %s3028_s13 = scalar_lea.vmem %s3027_s16, %s2575_s29 }
  0xf7   : > { %v786_v28 = vmul.f32 16.0, %v1998_v27  ;;  %vm790_vm2 = vweird.f32 %v1998_v27  ;;  %v1993_v59 = vld [vmem:[%s3028_s13] ss:$0 sm:$0xff] }
  0xf8   : > { %v782_v25 = vsel %vm781_vm1, %v780_v24, 0.0 }
  0xf9   : > { %783 = vadd.xlane.f32.xlu0 %v782_v25  ;;  %v787_v29 = vsub.f32 1.0, %v786_v28 }
  0xfb   : > { %v788_v31 = vmul.f32 %v1998_v27, %v787_v29 }
  0xfd   : > { %v789_v32 = vadd.f32 %v1998_v27, %v788_v31 }
  0xff   : > { %v2625_v33 = vsel %vm790_vm2, %v1998_v27, %v789_v32  ;;  %v2660_v27 = vadd.s32 1, %v2636_v51 }
 0x101   : > { %1974 = vset.pattern.permute.xlu2 %v2660_v27  ;;  %1972 = vset.pattern.permute.xlu1 %v2660_v27 }
 0x16c   : > { %v784_v34 = vpop.xlane.xlu0 %783 }
 0x16d   : > { %v792_v35 = vmul.f32 %v2625_v33, %v784_v34 }
 0x16f   : > { %v793_v36 = vadd.f32 1e-05, %v792_v35  ;;  %v1043_v35 = vadd.s32 9, %v2636_v51 }
 0x171   : > { %1999 = vrsqrt.f32 %v793_v36  ;;  %vm800_vm4 = vweird.f32 %v793_v36 }
 0x177   : > { %v2000_v37 = vpop.eup %1999 }
 0x178   : > { %v795_v38 = vmul.f32 %v2000_v37, %v793_v36  ;;  %vm801_vm3 = vweird.f32 %v2000_v37 }
 0x179   : > { %vm802_vm5 = vmor %vm800_vm4, %vm801_vm3 }
 0x17a   : > { %v796_v39 = vmul.f32 %v2000_v37, %v795_v38 }
 0x17c   : > { %v797_v40 = vmul.f32 0.5, %v796_v39 }
 0x17e   : > { %v798_v41 = vsub.f32 1.5, %v797_v40 }
 0x180   : > { %v799_v42 = vmul.f32 %v2000_v37, %v798_v41 }
 0x182   : > { %v803_v44 = vsel %vm802_vm5, %v2000_v37, %v799_v42  ;;  %v2676_v37 = vadd.s32 25, %v2636_v51  ;;  %v2682_v42 = vadd.s32 17, %v2636_v51  ;;  %vm1402_vm5 = vcmask 1041409  }
 0x183   : > { %v804_v45 = vmul.f32 %v803_v44, %v778_v23 }
 0x185   : > { %v808_v46 = vmul.f32 %v1992_v43, %v804_v45 }
 0x187   : > { %v809_v47 = vpack.c.bf16 %v808_v46, %v808_v46 }
 0x189   : > { %1791 = vmatmul.msk.bf16.vlgmr.msra.gmra.mxu0 %vm781_vm1, %v809_v47 }
 0x206   : > { %v2640_v53 = vpop.f32.mrf.mxu0 }
 0x207   : > { %v842_v55 = vrot.slane %v2640_v53, 5  ;;  %v848_v56 = vrot.slane %v2640_v53, 6  ;;  %v854_v57 = vrot.slane %v2640_v53, 7  ;;  %v860_v7 = vmul.f32 %v859_v2, %v2640_v53 }
 0x208   : > { %v1425_v36 = vsub.f32 0.0, %v2640_v53 }
 0x209   : > { %v843_v60 = vsel %vm841_vm6, %v842_v55, 0.0  ;;  %v849_v61 = vsel %vm847_vm7, %v848_v56, 0.0  ;;  %v855_v0 = vsel %vm853_vm8, %v854_v57, 0.0  ;;  %vm1404_vm6 = vcmask 1042434  }
 0x20a   : > { %v845_v62 = vmul.f32 %v844_v54, %v843_v60  ;;  %v851_v1 = vmul.f32 %v850_v58, %v849_v61  ;;  %v857_v6 = vmul.f32 %v856_v63, %v855_v0  ;;  %v1426_v38 = vmul.f32 1.442695, %v1425_v36  ;;  %v1994_v60 = vld [vmem:[%s722_s6] ss:$0 sm:$0xff]  ;;  %s3032_s6 = sld [smem:[#allocation22_spill]] }
 0x20b   : > { %vm1406_vm7 = vcmask 1043459   ;;  %vm1408_vm8 = vcmask 1044484  }
 0x20c   : > { %v846_v3 = vadd.f32 %v1993_v59, %v845_v62 }
 0x20e   : > { %v832_v4 = vpop.f32.mrf.mxu0  ;;  %v852_v5 = vadd.f32 %v851_v1, %v846_v3 }
 0x210   : > { %v858_v8 = vadd.f32 %v857_v6, %v852_v5  ;;  %p1810_p0 = scmp.ne.s32.totalorder %s3032_s6, 1 }
 0x211   : > { %s3033_s27 = sld [smem:[#allocation46_spill]] (!%p1810_p0) }
 0x212   : > { %v861_v9 = vadd.f32 %v860_v7, %v858_v8  ;;  %v948_v8 = vld [vmem:[%s2605_s28] sm:$0xff]  ;;  %s3034_s5 = sld [smem:[#allocation45_spill]] (!%p1810_p0) }
 0x213   : > { %v950_v12 = vmul.f32 1.442695, %v948_v8 }
 0x214   : > { %v862_v10 = vsub.f32 0.0, %v861_v9 }
 0x216   : > { %v863_v11 = vmul.f32 1.442695, %v862_v10 }
 0x218   : > { %2001 = vpow2.f32 %v863_v11 }
 0x21e   : > { %v2002_v13 = vpop.eup %2001 }
 0x21f   : > { %v865_v14 = vadd.f32 1.0, %v2002_v13 }
 0x221   : > { %2003 = vrcp.f32 %v865_v14  ;;  %v877_v18 = vand.u32 2147483648, %v865_v14  ;;  %v875_v20 = vand.u32 2147483647, %v865_v14  ;;  %vm871_vm10 = vweird.f32 %v865_v14 }
 0x222   : > { %2005 = vpow2.f32 %v1426_v38 }
 0x223   : > { %v878_v22 = vor.u32 1.1754944e-38, %v877_v18  ;;  %vm876_vm12 = vcmp.eq.f32.partialorder %v875_v20, 8.507059e+37 }
 0x227   : > { %v2004_v15 = vpop.eup %2003 }
 0x228   : > { %v867_v16 = vmul.f32 %v2004_v15, %v865_v14  ;;  %vm872_vm9 = vweird.f32 %v2004_v15  ;;  %v2006_v39 = vpop.eup %2005 }
 0x229   : > { %vm873_vm11 = vmor %vm871_vm10, %vm872_vm9  ;;  %v1428_v41 = vadd.f32 1.0, %v2006_v39  ;;  %vm1410_vm9 = vcmask 1045509   ;;  %vm1412_vm10 = vcmask 1046534  }
 0x22a   : > { %v868_v17 = vsub.f32 1.0, %v867_v16 }
 0x22b   : > { %2007 = vrcp.f32 %v1428_v41  ;;  %v1440_v51 = vand.u32 2147483648, %v1428_v41  ;;  %vm1434_vm0 = vweird.f32 %v1428_v41  ;;  %v1438_v52 = vand.u32 2147483647, %v1428_v41 }
 0x22c   : > { %v869_v19 = vmul.f32 %v2004_v15, %v868_v17  ;;  %v949_v17 = vld [vmem:[%s2605_s28 + $0x8] sm:$0xff] }
 0x22d   : > { %v1441_v55 = vor.u32 1.1754944e-38, %v1440_v51  ;;  %vm1439_vm3 = vcmp.eq.f32.partialorder %v1438_v52, 8.507059e+37  ;;  %v952_v20 = vmul.f32 1.442695, %v949_v17 }
 0x22e   : > { %v870_v21 = vadd.f32 %v2004_v15, %v869_v19 }
 0x230   : > { %v874_v23 = vsel %vm873_vm11, %v2004_v15, %v870_v21  ;;  %vm1414_vm11 = vcmask 1047559  }
 0x231   : > { %v879_v24 = vsel %vm876_vm12, %v878_v22, %v874_v23  ;;  %v2008_v44 = vpop.eup %2007 }
 0x232   : > { %v2654_v25 = vmul.f32 %v879_v24, %v861_v9  ;;  %v1430_v46 = vmul.f32 %v2008_v44, %v1428_v41  ;;  %vm1435_vm15 = vweird.f32 %v2008_v44 }
 0x233   : > { %vm1436_vm2 = vmor %vm1434_vm0, %vm1435_vm15 }
 0x234   : > { %v882_v26 = vpack.c.bf16 %v2654_v25, %v2654_v25  ;;  %v1431_v47 = vsub.f32 1.0, %v1430_v46 }
 0x236   : > { %1800 = vmatmul.msk.bf16.vlgmr.msra.gmra.mxu1 %vm899_vm13, %v882_v26  ;;  %v1432_v49 = vmul.f32 %v2008_v44, %v1431_v47 }
 0x238   : > { %v1433_v50 = vadd.f32 %v2008_v44, %v1432_v49 }
 0x23a   : > { %v1437_v54 = vsel %vm1436_vm2, %v2008_v44, %v1433_v50 }
 0x23b   : > { %v1442_v56 = vsel %vm1439_vm3, %v1441_v55, %v1437_v54 }
 0x23c   : > { %v1444_v57 = vmul.f32 %v1442_v56, %v2640_v53  ;;  %v1995_v53 = vld [vmem:[%s719_s21] ss:$0 sm:$0xff] }
 0x2b3   : > { %v912_v28 = vpop.f32.mrf.mxu1 }
 0x2b4   : > { %917 = vst.msk [vmem:[#allocation5] sm:$0xff] %vm916_vm14, %v912_v28  ;;  %925 = vperm.xlu0 %1971, %v912_v28  }
 0x2bb   : > { %v914_v29 = vpop.f32.mrf.mxu1  ;;  %v2664_v30 = vld [vmem:[#allocation5] sm:$0xff] }
 0x2bc   : > { %1977 = vset.pattern.permute.xlu0 %v2660_v27  ;;  %v1047_v31 = vperm.slane %v2664_v30, 1  ;;  %v1034_v32 = vperm.slane %v2664_v30, 0  ;;  %v2670_v34 = vperm.slane %v2664_v30, 6  ;;  %v1060_v40 = vperm.slane %v2664_v30, 2 }
 0x2bd   : > { %v2686_v43 = vperm.slane %v2664_v30, 3  ;;  %v2691_v45 = vperm.slane %v2664_v30, 4  ;;  %v1099_v48 = vperm.slane %v2664_v30, 5  ;;  %v2712_v59 = vperm.slane %v2664_v30, 7 }
 0x2be   : > { %1052 = vperm.xlu2 %1974, %v1047_v31   ;;  %1039 = vperm.xlu1 %1972, %v1034_v32  }
 0x2c4   : > { %1117 = vperm.xlu0 %1977, %v2670_v34  }
 0x2c6   : > { %1975 = vset.pattern.permute.xlu2 %v1043_v35  ;;  %1973 = vset.pattern.permute.xlu1 %v1043_v35 }
 0x2cc   : > { %1981 = vset.pattern.permute.xlu0 %v2676_v37 }
 0x2ce   : > { %1058 = vperm.xlu2 %1975, %v1047_v31   ;;  %1045 = vperm.xlu1 %1973, %v1034_v32  }
 0x2d4   : > { %1232 = vperm.xlu0 %1981, %v1047_v31  }
 0x2d6   : > { %1071 = vperm.xlu2 %1975, %v1060_v40   ;;  %1976 = vset.pattern.permute.xlu1 %v2660_v27 }
 0x2dc   : > { %1986 = vset.pattern.permute.xlu0 %v2682_v42 }
 0x2de   : > { %1084 = vperm.xlu2 %1975, %v2686_v43   ;;  %1065 = vperm.xlu1 %1976, %v1060_v40  }
 0x2e4   : > { %1250 = vperm.xlu0 %1986, %v2686_v43  }
 0x2e6   : > { %1097 = vperm.xlu2 %1975, %v2691_v45   ;;  %1078 = vperm.xlu1 %1976, %v2686_v43  }
 0x2ec   : > { %1989 = vset.pattern.permute.xlu0 %v2676_v37 }
 0x2ee   : > { %1110 = vperm.xlu2 %1975, %v1099_v48   ;;  %1091 = vperm.xlu1 %1976, %v2691_v45  }
 0x2f4   : > { %1280 = vperm.xlu0 %1989, %v1099_v48  }
 0x2f6   : > { %1979 = vset.pattern.permute.xlu2 %v2682_v42  ;;  %1104 = vperm.xlu1 %1976, %v1099_v48  }
 0x2fc   : > { %1446 = vrot.lane.b32.xlu0 %v1444_v57, %s2315_s7 }
 0x2fe   : > { %1214 = vperm.xlu2 %1979, %v1034_v32   ;;  %1978 = vset.pattern.permute.xlu1 %v1043_v35 }
 0x306   : > { %1226 = vperm.xlu2 %1979, %v1047_v31   ;;  %1123 = vperm.xlu1 %1978, %v2670_v34  }
 0x30e   : > { %1983 = vset.pattern.permute.xlu2 %v2676_v37  ;;  %1980 = vset.pattern.permute.xlu1 %v2676_v37 }
 0x316   : > { %1244 = vperm.xlu2 %1983, %v1060_v40   ;;  %1220 = vperm.xlu1 %1980, %v1034_v32  }
 0x318   : > { %v2704_v58 = vpop.permute.xlu2 %1052 }
 0x31e   : > { %1985 = vset.pattern.permute.xlu2 %v1043_v35  ;;  %1982 = vset.pattern.permute.xlu1 %v2682_v42 }
 0x326   : > { %v926_v61 = vpop.permute.xlu0 %925  ;;  %1136 = vperm.xlu2 %1985, %v2712_v59   ;;  %1238 = vperm.xlu1 %1982, %v1060_v40  }
 0x327   : > { %v931_v62 = vmul.f32 %v1995_v53, %v926_v61 }
 0x328   : > { %v2720_v0 = vpop.permute.xlu2 %1058 }
 0x329   : > { %v932_v63 = vadd.f32 %v1994_v60, %v931_v62 }
 0x32b   : > { %v934_v1 = vand.u32 2147483647, %v932_v63  ;;  %v933_v16 = vmax.f32 %v932_v63, 0.0 }
 0x32d   : > { %v935_v2 = vsub.f32 0.0, %v934_v1 }
 0x32e   : > { %1988 = vset.pattern.permute.xlu2 %v2682_v42  ;;  %1984 = vset.pattern.permute.xlu1 %v2660_v27 }
 0x32f   : > { %v936_v3 = vmul.f32 1.442695, %v935_v2 }
 0x330   : > { %v2724_v4 = vpop.permute.xlu2 %1071  ;;  %v1040_v24 = vpop.permute.xlu1 %1039 }
 0x331   : > { %2009 = vpow2.f32 %v936_v3 }
 0x336   : > { %1262 = vperm.xlu2 %1988, %v2691_v45   ;;  %1130 = vperm.xlu1 %1984, %v2712_v59  }
 0x337   : > { %v2010_v5 = vpop.eup %2009 }
 0x338   : > { %v938_v6 = vadd.f32 1.0, %v2010_v5  ;;  %v941_v7 = vmul.f32 -0.5, %v2010_v5  ;;  %v944_v10 = vand.u32 2147483647, %v2010_v5  ;;  %v2729_v11 = vpop.permute.xlu2 %1084 }
 0x33a   : > { %2011 = vlog2.f32 %v938_v6  ;;  %v942_v9 = vadd.f32 1.0, %v941_v7  ;;  %vm945_vm4 = vcmp.lt.f32.partialorder %v944_v10, 0.0004427343  ;;  %v2773_v6 = vpop.permute.xlu0 %1117 }
 0x33b   : > { %2013 = vpow2.f32 %v950_v12 }
 0x33c   : > { %v943_v15 = vmul.f32 %v2010_v5, %v942_v9  ;;  %2015 = vpow2.f32 %v952_v20 }
 0x33e   : > { %1274 = vperm.xlu2 %1988, %v1099_v48   ;;  %1987 = vset.pattern.permute.xlu1 %v2676_v37 }
 0x340   : > { %v2012_v13 = vpop.eup %2011  ;;  %v2738_v22 = vpop.permute.xlu2 %1097 }
 0x341   : > { %v940_v14 = vmul.f32 0.6931472, %v2012_v13  ;;  %v2014_v23 = vpop.eup %2013  ;;  %v1046_v38 = vpop.permute.xlu1 %1045 }
 0x342   : > { %v2740_v26 = vsub.f32 0.0, %v2014_v23  ;;  %v2016_v30 = vpop.eup %2015 }
 0x343   : > { %v946_v18 = vsel %vm945_vm4, %v943_v15, %v940_v14 }
 0x344   : > { %v947_v19 = vadd.f32 %v946_v18, %v933_v16 }
 0x346   : > { %956 = vst.msk [vmem:[#allocation3] sm:$0xff] %vm899_vm13, %v947_v19  ;;  %v957_v21 = vmul.f32 %v947_v19, %v2654_v25  ;;  %1991 = vset.pattern.permute.xlu2 %v2676_v37  ;;  %1256 = vperm.xlu1 %1987, %v2686_v43   ;;  %v2750_v37 = vsub.f32 0.0, %v2016_v30 }
 0x348   : > { %958 = vst.msk [vmem:[#allocation4] sm:$0xff] %vm899_vm13, %v957_v21  ;;  %v2753_v40 = vpop.permute.xlu2 %1110 }
 0x34d   : > { %v2742_v27 = vld [vmem:[#allocation3] sm:$0xff] }
 0x34e   : > { %v963_v28 = vrot.slane %v2742_v27, 1  ;;  %v970_v29 = vperm.slane %v2742_v27, 0  ;;  %1292 = vperm.xlu2 %1991, %v2670_v34   ;;  %1268 = vperm.xlu1 %1987, %v2691_v45   ;;  %v964_v39 = vrot.slane %v2742_v27, 2 }
 0x34f   : > { %v2755_v41 = vld [vmem:[#allocation4] sm:$0xff] }
 0x350   : > { %v971_v31 = vperm.slane %v963_v28, 0  ;;  %v986_v32 = vmul.f32 %v970_v29, %v2740_v26  ;;  %v987_v44 = vmul.f32 %v970_v29, %v2750_v37  ;;  %v972_v45 = vperm.slane %v964_v39, 0  ;;  %v1066_v56 = vpop.permute.xlu1 %1065  ;;  %v1233_v28 = vpop.permute.xlu0 %1232 }
 0x351   : > { %v1139_v46 = vrot.slane %v2755_v41, 1  ;;  %v1146_v47 = vperm.slane %v2755_v41, 0  ;;  %v1140_v61 = vrot.slane %v2755_v41, 2 }
 0x352   : > { %v988_v35 = vmul.f32 %v971_v31, %v2740_v26  ;;  %v1002_v36 = vmul.f32 1.442695, %v986_v32  ;;  %v989_v48 = vmul.f32 %v971_v31, %v2750_v37  ;;  %v1004_v49 = vmul.f32 1.442695, %v987_v44 }
 0x353   : > { %v990_v50 = vmul.f32 %v972_v45, %v2740_v26  ;;  %v991_v54 = vmul.f32 %v972_v45, %v2750_v37  ;;  %v1162_v60 = vmul.f32 %v1146_v47, %v1040_v24  ;;  %v1148_v7 = vperm.slane %v1140_v61, 0 }
 0x354   : > { %2017 = vpow2.f32 %v1002_v36  ;;  %v1006_v43 = vmul.f32 1.442695, %v988_v35  ;;  %v1008_v51 = vmul.f32 1.442695, %v989_v48  ;;  %v1163_v9 = vmul.f32 %v1146_v47, %v1046_v38 }
 0x355   : > { %v1010_v55 = vmul.f32 1.442695, %v990_v50  ;;  %v1012_v1 = vmul.f32 1.442695, %v991_v54  ;;  %v1166_v18 = vmul.f32 %v1148_v7, %v1066_v56  ;;  %v965_v24 = vrot.slane %v2742_v27, 3 }
 0x356   : > { %1304 = vperm.xlu2 %1991, %v2712_v59   ;;  %1990 = vset.pattern.permute.xlu1 %v2682_v42  ;;  %2019 = vpow2.f32 %v1006_v43  ;;  %v1147_v42 = vperm.slane %v1139_v46, 0  ;;  %v1167_v29 = vmul.f32 %v1148_v7, %v2724_v4  ;;  %v966_v43 = vrot.slane %v2742_v27, 4 }
 0x357   : > { %2021 = vpow2.f32 %v1004_v49  ;;  %v973_v36 = vperm.slane %v965_v24, 0  ;;  %v967_v47 = vrot.slane %v2742_v27, 5  ;;  %v1141_v50 = vrot.slane %v2755_v41, 3 }
 0x358   : > { %v2765_v57 = vpop.permute.xlu2 %1214  ;;  %2023 = vpow2.f32 %v1008_v51  ;;  %v1164_v2 = vmul.f32 %v1147_v42, %v2704_v58  ;;  %v1165_v15 = vmul.f32 %v1147_v42, %v2720_v0  ;;  %v1079_v16 = vpop.permute.xlu1 %1078  ;;  %v974_v46 = vperm.slane %v966_v43, 0 }
 0x359   : > { %2025 = vpow2.f32 %v1010_v55  ;;  %v993_v39 = vmul.f32 %v973_v36, %v2750_v37  ;;  %v992_v45 = vmul.f32 %v973_v36, %v2740_v26  ;;  %v975_v51 = vperm.slane %v967_v47, 0 }
 0x35a   : > { %v2018_v52 = vpop.eup %2017  ;;  %2027 = vpow2.f32 %v1012_v1  ;;  %v995_v48 = vmul.f32 %v974_v46, %v2750_v37  ;;  %v994_v54 = vmul.f32 %v974_v46, %v2740_v26  ;;  %v1149_v55 = vperm.slane %v1141_v50, 0 }
 0x35b   : > { %v1178_v53 = vmul.f32 0.0, %v2018_v52  ;;  %v1016_v44 = vmul.f32 1.442695, %v993_v39  ;;  %v1014_v4 = vmul.f32 1.442695, %v992_v45  ;;  %v1143_v24 = vrot.slane %v2755_v41, 5 }
 0x35c   : > { %v2020_v63 = vpop.eup %2019  ;;  %v1020_v52 = vmul.f32 1.442695, %v995_v48  ;;  %v1169_v1 = vmul.f32 %v1149_v55, %v2729_v11 }
 0x35d   : > { %v2768_v62 = vadd.f32 %v1178_v53, %v1162_v60  ;;  %v2022_v5 = vpop.eup %2021  ;;  %2029 = vpow2.f32 %v1016_v44  ;;  %v997_v53 = vmul.f32 %v975_v51, %v2750_v37 }
 0x35e   : > { %1286 = vperm.xlu1 %1990, %v2670_v34   ;;  %v1179_v8 = vmul.f32 0.0, %v2022_v5  ;;  %v2024_v12 = vpop.eup %2023  ;;  %2031 = vpow2.f32 %v1014_v4 }
 0x35f   : > { %v1182_v3 = vmul.f32 %v2020_v63, %v2768_v62  ;;  %v2026_v14 = vpop.eup %2025  ;;  %2033 = vpow2.f32 %v1020_v52  ;;  %v1018_v63 = vmul.f32 1.442695, %v994_v54 }
 0x360   : > { %v2775_v13 = vadd.f32 %v1179_v8, %v1163_v9  ;;  %v1227_v34 = vpop.permute.xlu2 %1226  ;;  %v2028_v23 = vpop.eup %2027  ;;  %v1024_v9 = vmul.f32 1.442695, %v997_v53 }
 0x361   : > { %v1184_v10 = vadd.f32 %v1182_v3, %v1164_v2  ;;  %v1142_v2 = vrot.slane %v2755_v41, 4  ;;  %2035 = vpow2.f32 %v1018_v63 }
 0x362   : > { %v1183_v58 = vmul.f32 %v2024_v12, %v2775_v13  ;;  %2037 = vpow2.f32 %v1024_v9 }
 0x363   : > { %v1186_v17 = vmul.f32 %v2026_v14, %v1184_v10  ;;  %v1308_v19 = vmul.f32 %v1227_v34, %v1184_v10  ;;  %v2030_v56 = vpop.eup %2029  ;;  %v996_v10 = vmul.f32 %v975_v51, %v2740_v26  ;;  %v1150_v12 = vperm.slane %v1142_v2, 0 }
 0x364   : > { %v1185_v20 = vadd.f32 %v1183_v58, %v1165_v15  ;;  %v2032_v3 = vpop.eup %2031  ;;  %v1168_v14 = vmul.f32 %v1149_v55, %v1079_v16  ;;  %v1306_v34 = vmul.f32 %v2765_v57, %v2768_v62 }
 0x365   : > { %v2780_v21 = vadd.f32 %v1186_v17, %v1166_v18  ;;  %v1331_v31 = vsel %vm899_vm13, %v1308_v19, 0.0  ;;  %v2034_v15 = vpop.eup %2033 }
 0x366   : > { %1298 = vperm.xlu1 %1990, %v2712_v59   ;;  %v1187_v30 = vmul.f32 %v2028_v23, %v1185_v20  ;;  %v1309_v0 = vmul.f32 %v1233_v28, %v1185_v20  ;;  %v1092_v59 = vpop.permute.xlu1 %1091  ;;  %v1022_v20 = vmul.f32 1.442695, %v996_v10  ;;  %v1171_v23 = vmul.f32 %v1150_v12, %v2738_v22  ;;  %v1251_v22 = vpop.permute.xlu0 %1250 }
 0x367   : > { %v1190_v5 = vmul.f32 %v2032_v3, %v2780_v21  ;;  %v2036_v28 = vpop.eup %2035  ;;  %v1170_v36 = vmul.f32 %v1150_v12, %v1092_v59 }
 0x368   : > { %v2785_v32 = vadd.f32 %v1187_v30, %v1167_v29  ;;  %v1332_v35 = vsel %vm899_vm13, %v1309_v0, 0.0  ;;  %v1322_v29 = vsel %vm899_vm13, %v1306_v34, 0.0  ;;  %2039 = vpow2.f32 %v1022_v20 }
 0x369   : > { %v1333_v38 = vadd.f32 %v1332_v35, %v1331_v31  ;;  %v2807_v58 = vadd.f32 %v1190_v5, %v1168_v14  ;;  %v1151_v35 = vperm.slane %v1143_v24, 0  ;;  %v968_v24 = vrot.slane %v2742_v27, 6 }
 0x36a   : > { %v1191_v42 = vmul.f32 %v2030_v56, %v2785_v32 }
 0x36b   : > { %v1334_v8 = vrot.slane %v1333_v38, 4  ;;  %v1194_v30 = vmul.f32 %v2036_v28, %v2807_v58  ;;  %v1173_v4 = vmul.f32 %v1151_v35, %v2753_v40  ;;  %v976_v28 = vperm.slane %v968_v24, 0 }
 0x36c   : > { %v2802_v7 = vadd.f32 %v1191_v42, %v1169_v1 }
 0x36d   : > { %v1335_v17 = vadd.f32 %v1334_v8, %v1333_v38  ;;  %v2038_v38 = vpop.eup %2037 }
 0x36e   : > { %v1105_v49 = vpop.permute.xlu1 %1104  ;;  %v1195_v11 = vmul.f32 %v2034_v15, %v2802_v7  ;;  %v2040_v47 = vpop.eup %2039 }
 0x36f   : > { %v1336_v0 = vrot.slane %v1335_v17, 2  ;;  %v1172_v55 = vmul.f32 %v1151_v35, %v1105_v49  ;;  %v1281_v59 = vpop.permute.xlu0 %1280 }
 0x370   : > { %v1245_v60 = vpop.permute.xlu2 %1244  ;;  %v2816_v57 = vadd.f32 %v1195_v11, %v1171_v23 }
 0x371   : > { %v1337_v44 = vadd.f32 %v1336_v0, %v1335_v17  ;;  %v1311_v53 = vmul.f32 %v1245_v60, %v2785_v32  ;;  %v969_v0 = vrot.slane %v2742_v27, 7  ;;  %v1144_v27 = vrot.slane %v2755_v41, 6 }
 0x372   : > { %v1199_v43 = vmul.f32 %v2038_v38, %v2816_v57  ;;  %v998_v38 = vmul.f32 %v976_v28, %v2740_v26 }
 0x373   : > { %v1338_v52 = vrot.slane %v1337_v44, 1  ;;  %v1341_v10 = vsel %vm899_vm13, %v1311_v53, 0.0 }
 0x374   : > { %v2822_v50 = vadd.f32 %v1199_v43, %v1173_v4 }
 0x375   : > { %v1339_v1 = vadd.f32 %v1338_v52, %v1337_v44 }
 0x376   : > { %v1317_v42 = vmul.f32 %v1281_v59, %v2822_v50 }
 0x378   : > { %v2797_v61 = vpop.permute.xlu1 %1123  ;;  %v1368_v49 = vsel %vm899_vm13, %v1317_v42, 0.0 }
 0x380   : > { %v2810_v18 = vpop.permute.xlu2 %1136 }
 0x388   : > { %v1221_v19 = vpop.permute.xlu1 %1220 }
 0x389   : > { %v1307_v16 = vmul.f32 %v1221_v19, %v2775_v13  ;;  %v1196_v13 = vadd.f32 %v1194_v30, %v1170_v36  ;;  %v999_v30 = vmul.f32 %v976_v28, %v2750_v37 }
 0x38b   : > { %v1323_v62 = vsel %vm899_vm13, %v1307_v16, 0.0  ;;  %v1198_v51 = vmul.f32 %v2040_v47, %v1196_v13  ;;  %v1312_v16 = vmul.f32 %v1251_v22, %v2807_v58  ;;  %v977_v58 = vperm.slane %v969_v0, 0 }
 0x38c   : > { %v1324_v31 = vadd.f32 %v1323_v62, %v1322_v29  ;;  %v1026_v47 = vmul.f32 1.442695, %v998_v38 }
 0x38d   : > { %v2826_v63 = vadd.f32 %v1198_v51, %v1172_v55  ;;  %v1000_v53 = vmul.f32 %v977_v58, %v2740_v26 }
 0x38e   : > { %v1325_v39 = vrot.slane %v1324_v31, 4 }
 0x390   : > { %v1326_v45 = vadd.f32 %v1325_v39, %v1324_v31  ;;  %v1263_v46 = vpop.permute.xlu2 %1262  ;;  %v1349_v31 = vsel %vm899_vm13, %v1312_v16, 0.0 }
 0x391   : > { %v1314_v44 = vmul.f32 %v1263_v46, %v1196_v13 }
 0x392   : > { %v1327_v48 = vrot.slane %v1326_v45, 2 }
 0x393   : > { %v1358_v52 = vsel %vm899_vm13, %v1314_v44, 0.0 }
 0x394   : > { %v1328_v54 = vadd.f32 %v1327_v48, %v1326_v45  ;;  %v1028_v45 = vmul.f32 1.442695, %v999_v30 }
 0x396   : > { %v1329_v56 = vrot.slane %v1328_v54, 1  ;;  %2041 = vpow2.f32 %v1028_v45 }
 0x397   : > { %2043 = vpow2.f32 %v1026_v47 }
 0x398   : > { %v1330_v2 = vadd.f32 %v1329_v56, %v1328_v54  ;;  %v1275_v40 = vpop.permute.xlu2 %1274  ;;  %v1239_v3 = vpop.permute.xlu1 %1238  ;;  %v1001_v54 = vmul.f32 %v977_v58, %v2750_v37 }
 0x399   : > { %v1316_v5 = vmul.f32 %v1275_v40, %v2826_v63  ;;  %v1310_v8 = vmul.f32 %v1239_v3, %v2780_v21 }
 0x39a   : > { %v1403_v9 = vsel %vm1402_vm5, %v1339_v1, %v1330_v2  ;;  %v1152_v1 = vperm.slane %v1144_v27, 0 }
 0x39b   : > { %v1367_v12 = vsel %vm899_vm13, %v1316_v5, 0.0  ;;  %v1340_v32 = vsel %vm899_vm13, %v1310_v8, 0.0 }
 0x39c   : > { %v1369_v60 = vadd.f32 %v1368_v49, %v1367_v12  ;;  %v1342_v14 = vadd.f32 %v1341_v10, %v1340_v32  ;;  %v2042_v3 = vpop.eup %2041  ;;  %v1175_v5 = vmul.f32 %v1152_v1, %v2797_v61  ;;  %v1030_v12 = vmul.f32 1.442695, %v1000_v53 }
 0x39d   : > { %v2044_v8 = vpop.eup %2043  ;;  %v1145_v32 = vrot.slane %v2755_v41, 7  ;;  %v1203_v26 = vmul.f32 %v2042_v3, %v2822_v50 }
 0x39e   : > { %v1343_v15 = vrot.slane %v1342_v14, 4  ;;  %v1370_v39 = vrot.slane %v1369_v60, 4 }
 0x39f   : > { %v1205_v61 = vadd.f32 %v1203_v26, %v1175_v5  ;;  %v1447_v5 = vpop.permute.xlu0 %1446 }
 0x3a0   : > { %v1344_v34 = vadd.f32 %v1343_v15, %v1342_v14  ;;  %v1826_v14 = vld [vmem:[%s2614_s23 + $0x8] sm:$0xff] }
 0x3a1   : > { %1476 = vmatpush.bf16.msra.mxu2 %v1826_v14 }
 0x3a2   : > { %v1345_v11 = vrot.slane %v1344_v34, 2 }
 0x3a4   : > { %v1346_v17 = vadd.f32 %v1345_v11, %v1344_v34  ;;  %v1174_v34 = vmul.f32 %v1152_v1, %v2773_v6 }
 0x3a6   : > { %v1347_v19 = vrot.slane %v1346_v17, 1 }
 0x3a8   : > { %v1348_v20 = vadd.f32 %v1347_v19, %v1346_v17  ;;  %v2834_v21 = vpop.permute.xlu1 %1130  ;;  %v1825_v17 = vld [vmem:[%s2614_s23] sm:$0xff] }
 0x3a9   : > { %1477 = vmatpush.bf16.msra.mxu2 %v1825_v17 }
 0x3aa   : > { %v1405_v23 = vsel %vm1404_vm6, %v1348_v20, %v1403_v9  ;;  %v1293_v9 = vpop.permute.xlu2 %1292  ;;  %v1153_v20 = vperm.slane %v1145_v32, 0 }
 0x3ac   : > { %v1176_v0 = vmul.f32 %v1153_v20, %v2834_v21 }
 0x3b2   : > { %v1305_v38 = vpop.permute.xlu2 %1304 }
 0x3b8   : > { %v1257_v29 = vpop.permute.xlu1 %1256 }
 0x3b9   : > { %v1313_v62 = vmul.f32 %v1257_v29, %v2802_v7  ;;  %v1371_v7 = vadd.f32 %v1370_v39, %v1369_v60  ;;  %v1202_v60 = vmul.f32 %v2044_v8, %v2826_v63  ;;  %v1177_v63 = vmul.f32 %v1153_v20, %v2810_v18 }
 0x3bb   : > { %v1350_v35 = vsel %vm899_vm13, %v1313_v62, 0.0  ;;  %v1372_v46 = vrot.slane %v1371_v7, 2  ;;  %v1204_v24 = vadd.f32 %v1202_v60, %v1174_v34 }
 0x3bc   : > { %v1351_v36 = vadd.f32 %v1350_v35, %v1349_v31 }
 0x3bd   : > { %v1373_v37 = vadd.f32 %v1372_v46, %v1371_v7 }
 0x3be   : > { %v1352_v43 = vrot.slane %v1351_v36, 4 }
 0x3bf   : > { %v1374_v11 = vrot.slane %v1373_v37, 1 }
 0x3c0   : > { %v1353_v22 = vadd.f32 %v1352_v43, %v1351_v36  ;;  %v1269_v4 = vpop.permute.xlu1 %1268 }
 0x3c1   : > { %v1315_v48 = vmul.f32 %v1269_v4, %v2816_v57  ;;  %v1032_v57 = vmul.f32 1.442695, %v1001_v54  ;;  %v1375_v28 = vadd.f32 %v1374_v11, %v1373_v37 }
 0x3c2   : > { %v1354_v51 = vrot.slane %v1353_v22, 2 }
 0x3c3   : > { %v1359_v55 = vsel %vm899_vm13, %v1315_v48, 0.0  ;;  %2045 = vpow2.f32 %v1032_v57  ;;  %v1996_v57 = vld [vmem:[%s730_s3] ss:$0 sm:$0xff] }
 0x3c4   : > { %v1355_v59 = vadd.f32 %v1354_v51, %v1353_v22  ;;  %v1360_v13 = vadd.f32 %v1359_v55, %v1358_v52  ;;  %2047 = vpow2.f32 %v1030_v12 }
 0x3c6   : > { %v1356_v56 = vrot.slane %v1355_v59, 1  ;;  %v1361_v42 = vrot.slane %v1360_v13, 4 }
 0x3c8   : > { %v1357_v2 = vadd.f32 %v1356_v56, %v1355_v59  ;;  %v1362_v40 = vadd.f32 %v1361_v42, %v1360_v13 }
 0x3c9   : > { %v2046_v16 = vpop.eup %2045 }
 0x3ca   : > { %v1407_v49 = vsel %vm1406_vm7, %v1357_v2, %v1405_v23  ;;  %v1363_v10 = vrot.slane %v1362_v40, 2  ;;  %v1319_v23 = vmul.f32 %v1293_v9, %v1205_v61  ;;  %v1207_v6 = vmul.f32 %v2046_v16, %v1205_v61  ;;  %v2048_v36 = vpop.eup %2047 }
 0x3cb   : > { %v1206_v44 = vmul.f32 %v2048_v36, %v1204_v24  ;;  %v1423_v2 = vmul.f32 %v1996_v57, %v2654_v25 }
 0x3cc   : > { %v1364_v15 = vadd.f32 %v1363_v10, %v1362_v40  ;;  %v1377_v30 = vsel %vm899_vm13, %v1319_v23, 0.0  ;;  %v1209_v43 = vadd.f32 %v1207_v6, %v1177_v63 }
 0x3cd   : > { %v1208_v18 = vadd.f32 %v1206_v44, %v1176_v0 }
 0x3ce   : > { %v1365_v19 = vrot.slane %v1364_v15, 1  ;;  %v1321_v58 = vmul.f32 %v1305_v38, %v1209_v43 }
 0x3d0   : > { %v1366_v41 = vadd.f32 %v1365_v19, %v1364_v15  ;;  %v1287_v50 = vpop.permute.xlu1 %1286  ;;  %v1386_v48 = vsel %vm899_vm13, %v1321_v58, 0.0 }
 0x3d1   : > { %v1318_v29 = vmul.f32 %v1287_v50, %v1204_v24 }
 0x3d2   : > { %v1409_v62 = vsel %vm1408_vm8, %v1366_v41, %v1407_v49  ;;  %v2049_v49 = vld [vmem:[#allocation2] sm:$0xff] }
 0x3d3   : > { %v1411_v31 = vsel %vm1410_vm9, %v1375_v28, %v1409_v62  ;;  %v1376_v35 = vsel %vm899_vm13, %v1318_v29, 0.0 }
 0x3d4   : > { %v1378_v39 = vadd.f32 %v1377_v30, %v1376_v35 }
 0x3d6   : > { %v1379_v45 = vrot.slane %v1378_v39, 4 }
 0x3d8   : > { %v1380_v22 = vadd.f32 %v1379_v45, %v1378_v39  ;;  %v1299_v4 = vpop.permute.xlu1 %1298 }
 0x3d9   : > { %v1320_v47 = vmul.f32 %v1299_v4, %v1208_v18 }
 0x3da   : > { %v1381_v7 = vrot.slane %v1380_v22, 2 }
 0x3db   : > { %v1385_v27 = vsel %vm899_vm13, %v1320_v47, 0.0 }
 0x3dc   : > { %v1382_v21 = vadd.f32 %v1381_v7, %v1380_v22  ;;  %v1387_v51 = vadd.f32 %v1386_v48, %v1385_v27 }
 0x3de   : > { %v1383_v52 = vrot.slane %v1382_v21, 1  ;;  %v1388_v54 = vrot.slane %v1387_v51, 4 }
 0x3e0   : > { %v1384_v55 = vadd.f32 %v1383_v52, %v1382_v21  ;;  %v1389_v59 = vadd.f32 %v1388_v54, %v1387_v51 }
 0x3e2   : > { %v1413_v13 = vsel %vm1412_vm10, %v1384_v55, %v1411_v31  ;;  %v1390_v46 = vrot.slane %v1389_v59, 2 }
 0x3e4   : > { %v1391_v56 = vadd.f32 %v1390_v46, %v1389_v59 }
 0x3e6   : > { %v1392_v42 = vrot.slane %v1391_v56, 1 }
 0x3e8   : > { %v1393_v53 = vadd.f32 %v1392_v42, %v1391_v56 }
 0x3ea   : > { %v1415_v1 = vsel %vm1414_vm11, %v1393_v53, %v1413_v13 }
 0x3eb   : > { %1417 = vst.msk [vmem:[#allocation6] sm:$0xff] %vm899_vm13, %v1415_v1 }
 0x3f2   : > { %v1418_v40 = vld [vmem:[#allocation6] sm:$0xff] }
 0x3f3   : > { %v1424_v3 = vadd.f32 %v1423_v2, %v1418_v40 }
 0x3f5   : > { %v1449_v37 = vmul.f32 %v1447_v5, %v1424_v3 }
 0x3f7   : > { %v1450_v8 = vpack.c.bf16 %v1449_v37, %v1449_v37 }
 0x3f9   : > { %1809 = vmatmul.msk.bf16.vlgmr.msra.gmra.mxu2 %vm899_vm13, %v1450_v8 }
 0x47c   : > { %v1479_v9 = vpop.f32.mrf.mxu2 }
 0x47d   : > { %v1480_v10 = vadd.f32 %v2049_v49, %v1479_v9 }
 0x47f   : > { %1483 = vst.msk [vmem:[#allocation2] sm:$0xff] %vm781_vm1, %v1480_v10 }
 0x480   : > { %1487 = sbr.rel (%p1810_p0) target bundleno = 1442 (0x5a2), region = 104 }
 0x484   : > { %v1481_v12 = vpop.f32.mrf.mxu2 }
 0x485   : > { %v1489_v32 = vmul.f32 %v1480_v10, %v1480_v10  ;;  %v1827_v25 = vld [vmem:[%s3033_s27] sm:$0xff]  ;;  %vm1539_vm15 = vcmask 24576  }
 0x486   : > { %1533 = vmatpush.bf16.msra.mxu0 %v1827_v25  ;;  %v2050_v23 = vld [vmem:[%s3034_s5] ss:$0 sm:$0xff] }
 0x487   : > { %v1490_v26 = vsel %vm781_vm1, %v1489_v32, 0.0 }
 0x488   : > { %1491 = vadd.xlane.f32.xlu0 %v1490_v26 }
 0x4fb   : > { %v1492_v60 = vpop.xlane.xlu0 %1491 }
 0x4fc   : > { %v1493_v14 = vmul.f32 %v1492_v60, %v2625_v33 }
 0x4fe   : > { %v1494_v15 = vadd.f32 1e-05, %v1493_v14 }
 0x500   : > { %2051 = vrsqrt.f32 %v1494_v15  ;;  %vm1501_vm13 = vweird.f32 %v1494_v15 }
 0x506   : > { %v2052_v34 = vpop.eup %2051 }
 0x507   : > { %v1496_v11 = vmul.f32 %v2052_v34, %v1494_v15  ;;  %vm1502_vm12 = vweird.f32 %v2052_v34 }
 0x508   : > { %vm1503_vm14 = vmor %vm1501_vm13, %vm1502_vm12 }
 0x509   : > { %v1497_v61 = vmul.f32 %v2052_v34, %v1496_v11 }
 0x50b   : > { %v1498_v17 = vmul.f32 0.5, %v1497_v61 }
 0x50d   : > { %v1499_v19 = vsub.f32 1.5, %v1498_v17 }
 0x50f   : > { %v1500_v20 = vmul.f32 %v2052_v34, %v1499_v19 }
 0x511   : > { %v1504_v24 = vsel %vm1503_vm14, %v2052_v34, %v1500_v20 }
 0x512   : > { %v1505_v41 = vmul.f32 %v1504_v24, %v1480_v10 }
 0x514   : > { %v1509_v50 = vmul.f32 %v2050_v23, %v1505_v41 }
 0x516   : > { %v1512_v33 = vpack.c.bf16 %v1509_v50, %v1509_v50 }
 0x518   : > { %v1514_v16 = vshrl.u32 %v1512_v33, 16 }
 0x51a   : > { %v1516_v63 = vrot.slane %v1514_v16, 3 }
 0x51c   : > { %1815 = vmatmul.msk.bf16.vlgmr.msra.gmra.mxu0 %vm781_vm1, %v1516_v63 }
 0x599   : > { %v1535_v28 = vpop.f32.mrf.mxu0 }
 0x59a   : > { %1540 = vst.msk [vmem:[%s2619_s30] sm:$0x1] %vm1539_vm15, %v1535_v28 }
 0x5a1   : > { %v1537_v29 = vpop.f32.mrf.mxu0 }
 0x5a2 PF: > { %s3035_s26 = sld [smem:[#allocation23_spill]]  ;;  %s1552_s12 = sshll.u32 %s2619_s30, 4  ;;  %s1553_s12 = int_to_ptr.vmem [resolvable:$true] %s1552_s12 }
 0x5a3   : > { %s3036_s14 = sld [smem:[#allocation47_spill]] }
 0x5a4   : > { %s3037_s8 = sld [smem:[#allocation20_spill]] }
 0x5a9   : > { %s1550_s2 = scalar_lea.hbm %s3036_s14, %s3035_s26  ;;  %s2193_s19 = scalar_lea.hbm %s3036_s14, 2 }
 0x5aa   : > { %s1554_s16 = sshll.u32 %s1550_s2, 4  ;;  %s3039_s13 = sand.u32 1, %s3037_s8   ;;  %s1555_s16 = int_to_ptr.hbm [resolvable:$true] %s1554_s16 }
 0x5ab   : > { %s1542_s7 = scalar_lea.sflag [#allocation9], %s3039_s13  ;;  %s2187_s9 = sshra.s32 %s1555_s16, 4  ;;  %s2188_s9 = int_to_ptr.hbm [resolvable:$true] %s2187_s9 }
 0x5ac   : > { %s2189_s0 = scalar_lea.hbm %s2188_s9, 1  ;;  %p2194_p7 = scmp.lt.s32.totalorder %s2188_s9, %s3036_s14 }
 0x5ad   : > { %p2190_p1 = scmp.ne.s32.totalorder %s2188_s9, %s2189_s0  ;;  %p2195_p8 = scmp.lt.s32.totalorder %s2193_s19, %s2189_s0 }
 0x5af   : > { %p2191_p2 = pnand %p2190_p1, %p2475_p10  ;;  %p2196_p4 = por %p2195_p8, %p2194_p7 }
 0x5b1   : > { %p2192_p5 = pneg %p2191_p2 }
 0x5b3   : > { %p2197_p9 = pnand %p2196_p4, %p2192_p5 }
 0x5b5   : > { %2200 = shalt.err (!%p2197_p9)
}
 0x5b6   : > { %1840 = dma.vmem_to_hbm [thread:$0]  (%p2475_p10), %s1553_s12, 16, %s1555_s16, %s1542_s7  }
 0x5b7 PF: > { %s3040_s30 = sld [smem:[#allocation26_spill]] }
 0x5b8   : > { %s3041_s21 = sld [smem:[#allocation19_spill]] }
 0x5bd   : > { %p1865_p11 = scmp.ge.s32.totalorder %s3040_s30, 2 }
 0x5be   : > { %s1566_s6 = sand.u32 1, %s3041_s21  }
 0x5bf   : > { %p1857_p3 = pnand %p1865_p11, %p2480_p12  ;;  %s1567_s29 = scalar_lea.sflag [#allocation9], %s1566_s6 }
 0x5c1   : > { %p1858_p13 = pneg %p1857_p3 }
 0x5c3   : > { %2258 = dma.done.wait (%p1858_p13), %s1567_s29, 16  }
 0x5c4   : > { %2260 = vsyncadd (%p1858_p13), %s1567_s29, 4294967280  ;;  %s30_s28 = sadd.s32 1, %s3040_s30   ;;  %s3043_s18 = sld [smem:[#allocation20_spill]] }
 0x5c5   : > { %p27_p6 = scmp.ge.s32.totalorder %s30_s28, 6   ;;  %s3044_s3 = sld [smem:[#allocation21_spill]] }
 0x5c6   : > { %s3045_s23 = sld [smem:[#allocation31_spill]]  ;;  %s3050_s19 = smov %s2271_s20 }
 0x5c7   : > { %s3046_s27 = sld [smem:[#allocation24_spill]]  ;;  %s3051_s20 = smov %s2534_s24 }
 0x5c8   : > { %s3047_s25 = sld [smem:[#allocation25_spill]]  ;;  %s3052_s21 = smov %s2279_s22 }
 0x5c9   : > { %s3048_s26 = sld [smem:[#allocation29_spill]] }
 0x5ca   : > { %s3049_s15 = sld [smem:[#allocation30_spill]] }
 0x5cb   : > { %s3053_s22 = smov %s3044_s3 }
 0x5cc   :  { %29 = sbr.rel (!%p27_p6) target bundleno = 26 (0x1a), region = 178 }
 0x5cd   : > { %s3054_s24 = smov %s3046_s27 }
 0x5d0   : > { %s3055_s27 = smov %s3049_s15 }
 0x5d1   :  { %1572 = vsyncpa [#allocation8], 1 }
 0x5d2   :  { %1574 = vsyncpa [#allocation8 + $0x1], 1 }
 0x5d3   :  { %1575 = vsyncpa [#allocation11], 1 }
 0x5d4   :  { %1576 = vsyncpa [#allocation9], 1 }
 0x5d5   :  { %1578 = vsyncpa [#allocation9 + $0x1], 1 }

</bundles_post_ra>
